<compile_context>
chip_gen: v7x
topology: tpu7x:2x2x1
jax: 0.10.0
libtpu: 0.0.40
codegen_flags: <defaults>
</compile_context>

<pallas_src>
import jax
import jax.numpy as jnp
from jax.experimental import pallas as pl
from jax.experimental.pallas import tpu as pltpu

EPS = 1e-6
NEG_SLOPE = 0.2


# ---------------------------------------------------------------------------
# in-kernel helpers (points-on-lanes: every tile is (channels, points))
# ---------------------------------------------------------------------------

def _vnt_leaky(xs, w_t, cout, slope):
    """VNTLinearLeakyReLU on three (Cin, P) tiles (one per vector component).

    w_t rows = [softmax(W_feat).T ; (softmax(W_dir) - softmax(W_src)).T ;
                softmax(W_src).T]  -> (Cout + 2, Cin), so the matmul output
    directly carries q (rows :Cout), ko (row Cout) and o (row Cout + 1).
    """
    ys = [jnp.dot(w_t, xs[s], preferred_element_type=jnp.float32)
          for s in range(3)]                                  # 3 x (Cout+2, P)
    q = [y[:cout] for y in ys]                                # (Cout, P)
    ko = [y[cout:cout + 1] for y in ys]                       # (1, P)
    o = [y[cout + 1:cout + 2] for y in ys]                    # (1, P)
    qo = [q[s] - o[s] for s in range(3)]
    # vector-axis reductions unrolled -> 3 full-lane-width VPU FMAs
    dot = ko[0] * qo[0] + ko[1] * qo[1] + ko[2] * qo[2]       # (Cout, P)
    dns = ko[0] * ko[0] + ko[1] * ko[1] + ko[2] * ko[2]       # (1, P)
    scale = dot / (dns + EPS)                                 # exact (torch parity)
    out = []
    for s in range(3):
        neg = slope * q[s] + (1.0 - slope) * (q[s] - scale * ko[s])
        out.append(jnp.where(dot >= 0.0, q[s], neg))
    return out


def _vn_leaky(xs, w_t, cout, slope):
    """VNLinearLeakyReLU on three (Cin, P) tiles.  w_t rows = [W_feat ; W_dir]."""
    ys = [jnp.dot(w_t, xs[s], preferred_element_type=jnp.float32)
          for s in range(3)]                                  # 3 x (Cout+1, P)
    p = [y[:cout] for y in ys]
    d = [y[cout:cout + 1] for y in ys]
    dot = p[0] * d[0] + p[1] * d[1] + p[2] * d[2]             # (Cout, P)
    dns = d[0] * d[0] + d[1] * d[1] + d[2] * d[2]             # (1, P)
    scale = dot / (dns + EPS)
    out = []
    for s in range(3):
        neg = slope * p[s] + (1.0 - slope) * (p[s] - scale * d[s])
        out.append(jnp.where(dot >= 0.0, p[s], neg))
    return out


# ---------------------------------------------------------------------------
# the kernel
# ---------------------------------------------------------------------------

def _make_kernel(block_b, n_points, slope=NEG_SLOPE):
    inv_n = 1.0 / float(n_points)

    def kernel(x_ref, wa_ref, wb_ref, wc_ref, wd_ref,
               a_ref, cd_ref, A_ref, B_ref):
        ni = pl.program_id(1)
        cout = a_ref.shape[2]

        @pl.when(ni == 0)
        def _init():
            A_ref[...] = jnp.zeros_like(A_ref)
            B_ref[...] = jnp.zeros_like(B_ref)

        wa = wa_ref[...]              # (Cout+2, Cin)
        wb = wb_ref[...]              # (3, Cout)
        wc = wc_ref[...]              # (Cout+1, Cout)
        wd = wd_ref[...]              # (4, Cout)

        for b in range(block_b):                          # static unroll
            xs = [x_ref[b, s] for s in range(3)]          # 3 x (Cin, P)
            a = _vnt_leaky(xs, wa, cout, slope)           # 3 x (Cout, P)
            bb = _vnt_leaky(a, wb, 1, slope)              # 3 x (1, P)
            ab = [a[s] - bb[s] for s in range(3)]
            c = _vn_leaky(ab, wc, cout, slope)            # 3 x (Cout, P)
            d = _vn_leaky(c, wd, 3, slope)                # 3 x (3, P)

            for s in range(3):
                a_ref[b, s] = a[s].astype(a_ref.dtype)    # lane-dense store
                A_ref[b, s] += jnp.sum(a[s], axis=-1, keepdims=True)

            # cd[t, o, p] = sum_s c[s, o, p] * d[s, t, p] -- unrolled FMAs,
            # d row broadcast over the Cout sublanes.
            for t in range(3):
                cd_t = (c[0] * d[0][t:t + 1, :]
                        + c[1] * d[1][t:t + 1, :]
                        + c[2] * d[2][t:t + 1, :])        # (Cout, P)
                cd_ref[b, t] = cd_t.astype(cd_ref.dtype)
                B_ref[b, t] += jnp.sum(cd_t, axis=-1, keepdims=True)

        @pl.when(ni == pl.num_programs(1) - 1)
        def _finalize():
            A_ref[...] = A_ref[...] * inv_n
            B_ref[...] = B_ref[...] * inv_n

    return kernel


# ---------------------------------------------------------------------------
# tiling heuristics (padding-aware, per-generation VMEM budget)
# ---------------------------------------------------------------------------

def _vmem_capacity_bytes():
    """Per-generation physical VMEM (v5e/v6e: 128 MiB, v7x: 64 MiB)."""
    try:
        info = pltpu.get_tpu_info()
        cap = int(getattr(info, "vmem_capacity_bytes", 0) or 0)
        if cap > 0:
            return cap
    except Exception:
        pass
    return 64 * 1024 * 1024   # conservative v7x fallback


def _pad8(c):
    return ((c + 7) // 8) * 8


def _bytes_per_point(block_b, cin, cout, out_itemsize):
    """Real VMEM bytes per point: channels live on sublanes (padded to 8),
    points on lanes.  Counts double-buffered pipelined x/a/cd tiles plus a
    generous bound on live f32 intermediates."""
    x_pp = 3 * _pad8(cin) * 4
    a_pp = 3 * _pad8(cout) * out_itemsize
    cd_pp = 3 * _pad8(cout) * out_itemsize
    live = 3 * 10 * _pad8(cout) * 4
    return block_b * (2 * (x_pp + a_pp + cd_pp) + live)


def _choose_block_b(batch, n_points, target_pts=8192):
    """Amortize the ~0.35us per-step cost when N is small; keep >=2 batch grid
    steps so both v7x TensorCores get work."""
    if batch <= 1 or n_points >= target_pts:
        return 1
    want = max(1, target_pts // n_points)
    best = 1
    for cand in range(1, min(batch, want) + 1):
        if batch % cand == 0 and batch // cand >= 2:
            best = cand
    return best


def _choose_block_n(n_points, block_b, cin, cout, out_itemsize, budget_bytes):
    """Largest point tile under the VMEM budget; the lane tile must be a
    multiple of 128 unless it covers the whole point axis."""
    per_pt = max(1, _bytes_per_point(block_b, cin, cout, out_itemsize))
    cap_pts = max(128, budget_bytes // per_pt)
    if n_points <= cap_pts:
        return n_points
    m = (min(cap_pts, n_points) // 128) * 128
    while m >= 128:
        if n_points % m == 0:
            return m
        m -= 128
    # TODO(synk): pad the point axis when no 128-aligned divisor fits VMEM.
    return n_points


# ---------------------------------------------------------------------------
# parameters + wrapper
# ---------------------------------------------------------------------------

def init_params(key, in_channels, out_channels):
    """Synthetic parameters mirroring the PyTorch module (VNTLinear stores
    softmax(rand, dim=1); its forward re-softmaxes along dim=0)."""
    ks = jax.random.split(key, 10)

    def vnt_w(k, cin, cout):
        w = jax.random.uniform(k, (cin, cout), dtype=jnp.float32)
        return jax.nn.softmax(w, axis=1)

    def lin_w(k, cout, cin):
        bound = 1.0 / jnp.sqrt(jnp.float32(cin))
        return jax.random.uniform(k, (cout, cin), dtype=jnp.float32,
                                  minval=-bound, maxval=bound)

    return dict(
        wa_feat=vnt_w(ks[0], in_channels, out_channels),
        wa_dir=vnt_w(ks[1], in_channels, 1),
        wa_src=vnt_w(ks[2], in_channels, 1),
        wb_feat=vnt_w(ks[3], out_channels, 1),
        wb_dir=vnt_w(ks[4], out_channels, 1),
        wb_src=vnt_w(ks[5], out_channels, 1),
        wc_feat=lin_w(ks[6], out_channels, out_channels),
        wc_dir=lin_w(ks[7], 1, out_channels),
        wd_feat=lin_w(ks[8], 3, out_channels),
        wd_dir=lin_w(ks[9], 1, out_channels),
    )


def vntsvd_forward(x, params, *, block_b=None, block_n=None,
                   out_dtype=jnp.float32, native_layout=False):
    """VNTSVD forward.  Returns (R, t, a, cd, A, B).

    native_layout=False (default): a/cd come back in the PyTorch [B, N, 3, C]
    convention (one extra XLA transpose pass over each).  native_layout=True:
    a/cd stay in the kernel's lane-dense [B, 3, C, N] layout (no extra HBM
    pass) for channel-major consumers."""
    B, N, three, Cin = x.shape
    assert three == 3
    Cout = params["wa_feat"].shape[1]
    f32 = jnp.float32
    out_dtype = jnp.dtype(out_dtype)

    # ---- weight prep (trace-time glue): forward softmax(dim=0), pre-fold
    # (dir - src), transpose so the kernel computes W @ x ----
    sm = lambda w: jax.nn.softmax(w, axis=0)
    wa_t = jnp.concatenate(
        [sm(params["wa_feat"]).T,
         (sm(params["wa_dir"]) - sm(params["wa_src"])).T,
         sm(params["wa_src"]).T], axis=0).astype(f32)            # (Cout+2, Cin)
    wb_t = jnp.concatenate(
        [sm(params["wb_feat"]).T,
         (sm(params["wb_dir"]) - sm(params["wb_src"])).T,
         sm(params["wb_src"]).T], axis=0).astype(f32)            # (3, Cout)
    wc_t = jnp.concatenate([params["wc_feat"], params["wc_dir"]],
                           axis=0).astype(f32)                   # (Cout+1, Cout)
    wd_t = jnp.concatenate([params["wd_feat"], params["wd_dir"]],
                           axis=0).astype(f32)                   # (4, Cout)

    # ---- points-on-lanes input layout ----
    x_t = jnp.transpose(x.astype(f32), (0, 2, 3, 1))             # (B, 3, Cin, N)

    vmem_cap = _vmem_capacity_bytes()
    if block_b is None:
        block_b = _choose_block_b(B, N)
    if block_n is None:
        block_n = _choose_block_n(N, block_b, Cin, Cout, out_dtype.itemsize,
                                  budget_bytes=int(vmem_cap * 0.6))
    assert B % block_b == 0 and N % block_n == 0
    assert block_n == N or block_n % 128 == 0

    grid = (B // block_b, N // block_n)
    kernel = _make_kernel(block_b, N)

    in_specs = [
        pl.BlockSpec((block_b, 3, Cin, block_n), lambda bi, ni: (bi, 0, 0, ni)),
        pl.BlockSpec(wa_t.shape, lambda bi, ni: (0, 0)),
        pl.BlockSpec(wb_t.shape, lambda bi, ni: (0, 0)),
        pl.BlockSpec(wc_t.shape, lambda bi, ni: (0, 0)),
        pl.BlockSpec(wd_t.shape, lambda bi, ni: (0, 0)),
    ]
    out_specs = [
        pl.BlockSpec((block_b, 3, Cout, block_n), lambda bi, ni: (bi, 0, 0, ni)),
        pl.BlockSpec((block_b, 3, Cout, block_n), lambda bi, ni: (bi, 0, 0, ni)),
        pl.BlockSpec((block_b, 3, Cout, 1), lambda bi, ni: (bi, 0, 0, 0)),
        pl.BlockSpec((block_b, 3, Cout, 1), lambda bi, ni: (bi, 0, 0, 0)),
    ]
    out_shape = [
        jax.ShapeDtypeStruct((B, 3, Cout, N), out_dtype),   # a  (lane-dense)
        jax.ShapeDtypeStruct((B, 3, Cout, N), out_dtype),   # cd (lane-dense)
        jax.ShapeDtypeStruct((B, 3, Cout, 1), f32),         # A = mean_n a
        jax.ShapeDtypeStruct((B, 3, Cout, 1), f32),         # B = mean_n cd
    ]

    flops_pt = (2 * 3 * (Cin * (Cout + 2) + Cout * 3 + Cout * (Cout + 1)
                         + Cout * 4) + 60 * 3 * Cout)
    cost = pl.CostEstimate(
        flops=int(B * N * flops_pt),
        transcendentals=0,
        bytes_accessed=int(B * N * 3 * (Cin * 4 + 2 * Cout * out_dtype.itemsize)))

    a_nat, cd_nat, A4, B4 = pl.pallas_call(
        kernel,
        grid=grid,
        in_specs=in_specs,
        out_specs=out_specs,
        out_shape=out_shape,
        compiler_params=pltpu.CompilerParams(
            dimension_semantics=("parallel", "arbitrary"),
            vmem_limit_bytes=int(vmem_cap * 3 // 4),
        ),
        cost_estimate=cost,
    )(x_t, wa_t, wb_t, wc_t, wd_t)

    A = A4[..., 0].astype(f32)                               # (B, 3, Cout)
    Bm = B4[..., 0].astype(f32)

    if native_layout:
        a, cd = a_nat, cd_nat                                # (B, 3, Cout, N)
    else:
        # PyTorch [B, N, 3, Cout] convention (extra HBM pass over a/cd).
        a = jnp.transpose(a_nat, (0, 3, 1, 2))
        cd = jnp.transpose(cd_nat, (0, 3, 1, 2))

    # ---- tiny 3x3 Kabsch/SVD epilogue stays in plain JAX ----
    # TODO(synk): SVD / det / 3x3 matmuls have no Pallas primitive; kept in XLA.
    A_cent = jnp.mean(A, axis=2, keepdims=True)              # (B, 3, 1)
    B_cent = jnp.mean(Bm, axis=2, keepdims=True)
    Ac = A - A_cent
    Bc = Bm - B_cent
    H = jnp.einsum("bto,bso->bts", Ac, Bc)                   # (B, 3, 3)
    U, _, Vh = jnp.linalg.svd(H)
    det = jnp.linalg.det(U @ Vh)
    S = jnp.tile(jnp.eye(3, dtype=f32)[None], (B, 1, 1))
    S = S.at[:, 2, 2].set(det)
    R = U @ S @ Vh
    t = A_cent - R @ B_cent
    return R, t, a, cd, A, Bm


# ---------------------------------------------------------------------------
# pure-JAX reference (mirrors the PyTorch module) + demo
# ---------------------------------------------------------------------------

def _reference_forward(x, params):
    f32 = jnp.float32
    slope = NEG_SLOPE
    sm0 = lambda w: jax.nn.softmax(w, axis=0)

    def vnt(x, wf, wd, ws):
        q, k, o = x @ sm0(wf), x @ sm0(wd), x @ sm0(ws)
        ko, qo = k - o, q - o
        dot = (ko * qo).sum(axis=2, keepdims=True)
        dns = (ko * ko).sum(axis=2, keepdims=True)
        mask = (dot >= 0).astype(f32)
        return slope * q + (1 - slope) * (
            mask * q + (1 - mask) * (q - dot / (dns + EPS) * ko))

    def vn(x, wf, wd):
        p, d = x @ wf.T, x @ wd.T
        dot = (p * d).sum(axis=2, keepdims=True)
        dns = (d * d).sum(axis=2, keepdims=True)
        mask = (dot >= 0).astype(f32)
        return slope * p + (1 - slope) * (
            mask * p + (1 - mask) * (p - dot / (dns + EPS) * d))

    a = vnt(x, params["wa_feat"], params["wa_dir"], params["wa_src"])
    b = vnt(a, params["wb_feat"], params["wb_dir"], params["wb_src"])
    c = vn(a - b, params["wc_feat"], params["wc_dir"])
    d = vn(c, params["wd_feat"], params["wd_dir"])
    cd = jnp.einsum("bnso,bnst->bnto", c, d)
    return a, cd, a.mean(axis=1), cd.mean(axis=1)


if __name__ == "__main__":
    key = jax.random.PRNGKey(0)
    k_x, k_p = jax.random.split(key)

    B, N, IN_CH, OUT_CH = 2, 16, 4, 8
    x = jax.random.normal(k_x, (B, N, 3, IN_CH), dtype=jnp.float32)
    params = init_params(k_p, IN_CH, OUT_CH)

    outs = jax.block_until_ready(vntsvd_forward(x, params))
    R, t, a, cd, A, Bm = outs
    assert R.shape == (B, 3, 3)
    assert t.shape == (B, 3, 1)
    assert a.shape == (B, N, 3, OUT_CH)
    assert cd.shape == (B, N, 3, OUT_CH)
    assert A.shape == (B, 3, OUT_CH)
    assert Bm.shape == (B, 3, OUT_CH)

    a_r, cd_r, A_r, B_r = _reference_forward(x, params)
    err = max(float(jnp.max(jnp.abs(a - a_r))),
              float(jnp.max(jnp.abs(cd - cd_r))),
              float(jnp.max(jnp.abs(A - A_r))),
              float(jnp.max(jnp.abs(Bm - B_r))))
    assert err < 1e-3, f"mismatch vs pure-JAX reference: max abs err {err}"

    print("KERNEL_OK")
</pallas_src>

<mosaic_0001>
module attributes {stable_mosaic.version = 11 : i64} {
  func.func @kernel(%arg0: i32, %arg1: i32, %arg2: memref<1x3x4x16xf32, #tpu.memory_space<vmem>>, %arg3: memref<10x4xf32, #tpu.memory_space<vmem>>, %arg4: memref<3x8xf32, #tpu.memory_space<vmem>>, %arg5: memref<9x8xf32, #tpu.memory_space<vmem>>, %arg6: memref<4x8xf32, #tpu.memory_space<vmem>>, %arg7: memref<1x3x8x16xf32, #tpu.memory_space<vmem>>, %arg8: memref<1x3x8x16xf32, #tpu.memory_space<vmem>>, %arg9: memref<1x3x8x1xf32, #tpu.memory_space<vmem>>, %arg10: memref<1x3x8x1xf32, #tpu.memory_space<vmem>>) attributes {dimension_semantics = [#tpu.dimension_semantics<parallel>, #tpu.dimension_semantics<arbitrary>], iteration_bounds = array<i64: 2, 1>, scalar_prefetch = 0 : i64, scratch_operands = 0 : i64, tpu.core_type = #tpu.core_type<tc>, window_params = [{transform_indices = @transform_0, window_bounds = array<i64: 1, 3, 4, 16>}, {pipeline_mode = #tpu.pipeline_mode<synchronous>, transform_indices = @transform_1, window_bounds = array<i64: 10, 4>}, {pipeline_mode = #tpu.pipeline_mode<synchronous>, transform_indices = @transform_2, window_bounds = array<i64: 3, 8>}, {pipeline_mode = #tpu.pipeline_mode<synchronous>, transform_indices = @transform_3, window_bounds = array<i64: 9, 8>}, {pipeline_mode = #tpu.pipeline_mode<synchronous>, transform_indices = @transform_4, window_bounds = array<i64: 4, 8>}, {transform_indices = @transform_5, window_bounds = array<i64: 1, 3, 8, 16>}, {transform_indices = @transform_6, window_bounds = array<i64: 1, 3, 8, 16>}, {transform_indices = @transform_7, window_bounds = array<i64: 1, 3, 8, 1>}, {transform_indices = @transform_8, window_bounds = array<i64: 1, 3, 8, 1>}]} {
    %c0_i32 = arith.constant 0 : i32
    %0 = arith.cmpi eq, %arg1, %c0_i32 : i32
    %1 = arith.extui %0 : i1 to i32
    %c0_i32_0 = arith.constant 0 : i32
    %2 = arith.cmpi ne, %1, %c0_i32_0 : i32
    scf.if %2 {
      %cst_149 = arith.constant 0.000000e+00 : f32
      %365 = vector.broadcast %cst_149 : f32 to vector<1x3x8x1xf32>
      %c0_150 = arith.constant 0 : index
      %c0_151 = arith.constant 0 : index
      %c0_152 = arith.constant 0 : index
      %c0_153 = arith.constant 0 : index
      %366 = vector.load %arg9[%c0_150, %c0_151, %c0_152, %c0_153] : memref<1x3x8x1xf32, #tpu.memory_space<vmem>>, vector<1x3x8x1xf32>
      tpu.vector_store %arg9[%c0_150, %c0_151, %c0_152, %c0_153], %365 {strides = array<i32>} : memref<1x3x8x1xf32, #tpu.memory_space<vmem>>, vector<1x3x8x1xf32>,
      %cst_154 = arith.constant 0.000000e+00 : f32
      %367 = vector.broadcast %cst_154 : f32 to vector<1x3x8x1xf32>
      %c0_155 = arith.constant 0 : index
      %c0_156 = arith.constant 0 : index
      %c0_157 = arith.constant 0 : index
      %c0_158 = arith.constant 0 : index
      %368 = vector.load %arg10[%c0_155, %c0_156, %c0_157, %c0_158] : memref<1x3x8x1xf32, #tpu.memory_space<vmem>>, vector<1x3x8x1xf32>
      tpu.vector_store %arg10[%c0_155, %c0_156, %c0_157, %c0_158], %367 {strides = array<i32>} : memref<1x3x8x1xf32, #tpu.memory_space<vmem>>, vector<1x3x8x1xf32>,
    } else {
    }
    %c0 = arith.constant 0 : index
    %c0_1 = arith.constant 0 : index
    %3 = vector.load %arg3[%c0, %c0_1] : memref<10x4xf32, #tpu.memory_space<vmem>>, vector<10x4xf32>
    %c0_2 = arith.constant 0 : index
    %c0_3 = arith.constant 0 : index
    %4 = vector.load %arg4[%c0_2, %c0_3] : memref<3x8xf32, #tpu.memory_space<vmem>>, vector<3x8xf32>
    %c0_4 = arith.constant 0 : index
    %c0_5 = arith.constant 0 : index
    %5 = vector.load %arg5[%c0_4, %c0_5] : memref<9x8xf32, #tpu.memory_space<vmem>>, vector<9x8xf32>
    %c0_6 = arith.constant 0 : index
    %c0_7 = arith.constant 0 : index
    %6 = vector.load %arg6[%c0_6, %c0_7] : memref<4x8xf32, #tpu.memory_space<vmem>>, vector<4x8xf32>
    %c0_8 = arith.constant 0 : index
    %c0_9 = arith.constant 0 : index
    %c0_10 = arith.constant 0 : index
    %c0_11 = arith.constant 0 : index
    %7 = vector.load %arg2[%c0_8, %c0_9, %c0_10, %c0_11] : memref<1x3x4x16xf32, #tpu.memory_space<vmem>>, vector<1x1x4x16xf32>
    %8 = vector.shape_cast %7 : vector<1x1x4x16xf32> to vector<4x16xf32>
    %c0_12 = arith.constant 0 : index
    %c1 = arith.constant 1 : index
    %c0_13 = arith.constant 0 : index
    %c0_14 = arith.constant 0 : index
    %9 = vector.load %arg2[%c0_12, %c1, %c0_13, %c0_14] : memref<1x3x4x16xf32, #tpu.memory_space<vmem>>, vector<1x1x4x16xf32>
    %10 = vector.shape_cast %9 : vector<1x1x4x16xf32> to vector<4x16xf32>
    %c0_15 = arith.constant 0 : index
    %c2 = arith.constant 2 : index
    %c0_16 = arith.constant 0 : index
    %c0_17 = arith.constant 0 : index
    %11 = vector.load %arg2[%c0_15, %c2, %c0_16, %c0_17] : memref<1x3x4x16xf32, #tpu.memory_space<vmem>>, vector<1x1x4x16xf32>
    %12 = vector.shape_cast %11 : vector<1x1x4x16xf32> to vector<4x16xf32>
    %cst = arith.constant dense<0.000000e+00> : vector<10x16xf32>
    %13 = tpu.matmul %3, %8, %cst {dimension_numbers = #tpu.dot_dimension_numbers<[1], [0], [0], [1], [0, 0, 1, 1], [], []>} : vector<10x4xf32>, vector<4x16xf32>, vector<10x16xf32> -> vector<10x16xf32>
    %cst_18 = arith.constant dense<0.000000e+00> : vector<10x16xf32>
    %14 = tpu.matmul %3, %10, %cst_18 {dimension_numbers = #tpu.dot_dimension_numbers<[1], [0], [0], [1], [0, 0, 1, 1], [], []>} : vector<10x4xf32>, vector<4x16xf32>, vector<10x16xf32> -> vector<10x16xf32>
    %cst_19 = arith.constant dense<0.000000e+00> : vector<10x16xf32>
    %15 = tpu.matmul %3, %12, %cst_19 {dimension_numbers = #tpu.dot_dimension_numbers<[1], [0], [0], [1], [0, 0, 1, 1], [], []>} : vector<10x4xf32>, vector<4x16xf32>, vector<10x16xf32> -> vector<10x16xf32>
    %16 = vector.extract_strided_slice %13 {offsets = [0, 0], sizes = [8, 16], strides = [1, 1]} : vector<10x16xf32> to vector<8x16xf32>
    %17 = vector.extract_strided_slice %14 {offsets = [0, 0], sizes = [8, 16], strides = [1, 1]} : vector<10x16xf32> to vector<8x16xf32>
    %18 = vector.extract_strided_slice %15 {offsets = [0, 0], sizes = [8, 16], strides = [1, 1]} : vector<10x16xf32> to vector<8x16xf32>
    %19 = vector.extract_strided_slice %13 {offsets = [8, 0], sizes = [1, 16], strides = [1, 1]} : vector<10x16xf32> to vector<1x16xf32>
    %20 = vector.extract_strided_slice %14 {offsets = [8, 0], sizes = [1, 16], strides = [1, 1]} : vector<10x16xf32> to vector<1x16xf32>
    %21 = vector.extract_strided_slice %15 {offsets = [8, 0], sizes = [1, 16], strides = [1, 1]} : vector<10x16xf32> to vector<1x16xf32>
    %22 = vector.extract_strided_slice %13 {offsets = [9, 0], sizes = [1, 16], strides = [1, 1]} : vector<10x16xf32> to vector<1x16xf32>
    %23 = vector.extract_strided_slice %14 {offsets = [9, 0], sizes = [1, 16], strides = [1, 1]} : vector<10x16xf32> to vector<1x16xf32>
    %24 = vector.extract_strided_slice %15 {offsets = [9, 0], sizes = [1, 16], strides = [1, 1]} : vector<10x16xf32> to vector<1x16xf32>
    %25 = vector.broadcast %22 : vector<1x16xf32> to vector<8x16xf32>
    %26 = arith.subf %16, %25 : vector<8x16xf32>
    %27 = vector.broadcast %23 : vector<1x16xf32> to vector<8x16xf32>
    %28 = arith.subf %17, %27 : vector<8x16xf32>
    %29 = vector.broadcast %24 : vector<1x16xf32> to vector<8x16xf32>
    %30 = arith.subf %18, %29 : vector<8x16xf32>
    %31 = vector.broadcast %19 : vector<1x16xf32> to vector<8x16xf32>
    %32 = arith.mulf %31, %26 : vector<8x16xf32>
    %33 = vector.broadcast %20 : vector<1x16xf32> to vector<8x16xf32>
    %34 = arith.mulf %33, %28 : vector<8x16xf32>
    %35 = arith.addf %32, %34 : vector<8x16xf32>
    %36 = vector.broadcast %21 : vector<1x16xf32> to vector<8x16xf32>
    %37 = arith.mulf %36, %30 : vector<8x16xf32>
    %38 = arith.addf %35, %37 : vector<8x16xf32>
    %39 = arith.mulf %19, %19 : vector<1x16xf32>
    %40 = arith.mulf %20, %20 : vector<1x16xf32>
    %41 = arith.addf %39, %40 : vector<1x16xf32>
    %42 = arith.mulf %21, %21 : vector<1x16xf32>
    %43 = arith.addf %41, %42 : vector<1x16xf32>
    %cst_20 = arith.constant 9.99999997E-7 : f32
    %44 = vector.broadcast %cst_20 : f32 to vector<1x16xf32>
    %45 = arith.addf %43, %44 : vector<1x16xf32>
    %46 = vector.broadcast %45 : vector<1x16xf32> to vector<8x16xf32>
    %47 = arith.divf %38, %46 : vector<8x16xf32>
    %cst_21 = arith.constant 2.000000e-01 : f32
    %48 = vector.broadcast %cst_21 : f32 to vector<8x16xf32>
    %49 = arith.mulf %48, %16 : vector<8x16xf32>
    %50 = vector.broadcast %19 : vector<1x16xf32> to vector<8x16xf32>
    %51 = arith.mulf %47, %50 : vector<8x16xf32>
    %52 = arith.subf %16, %51 : vector<8x16xf32>
    %cst_22 = arith.constant 8.000000e-01 : f32
    %53 = vector.broadcast %cst_22 : f32 to vector<8x16xf32>
    %54 = arith.mulf %53, %52 : vector<8x16xf32>
    %55 = arith.addf %49, %54 : vector<8x16xf32>
    %cst_23 = arith.constant 0.000000e+00 : f32
    %56 = vector.broadcast %cst_23 : f32 to vector<8x16xf32>
    %57 = arith.cmpf oge, %38, %56 : vector<8x16xf32>
    %58 = arith.select %57, %16, %55 : vector<8x16xi1>, vector<8x16xf32>
    %cst_24 = arith.constant 2.000000e-01 : f32
    %59 = vector.broadcast %cst_24 : f32 to vector<8x16xf32>
    %60 = arith.mulf %59, %17 : vector<8x16xf32>
    %61 = vector.broadcast %20 : vector<1x16xf32> to vector<8x16xf32>
    %62 = arith.mulf %47, %61 : vector<8x16xf32>
    %63 = arith.subf %17, %62 : vector<8x16xf32>
    %cst_25 = arith.constant 8.000000e-01 : f32
    %64 = vector.broadcast %cst_25 : f32 to vector<8x16xf32>
    %65 = arith.mulf %64, %63 : vector<8x16xf32>
    %66 = arith.addf %60, %65 : vector<8x16xf32>
    %cst_26 = arith.constant 0.000000e+00 : f32
    %67 = vector.broadcast %cst_26 : f32 to vector<8x16xf32>
    %68 = arith.cmpf oge, %38, %67 : vector<8x16xf32>
    %69 = arith.select %68, %17, %66 : vector<8x16xi1>, vector<8x16xf32>
    %cst_27 = arith.constant 2.000000e-01 : f32
    %70 = vector.broadcast %cst_27 : f32 to vector<8x16xf32>
    %71 = arith.mulf %70, %18 : vector<8x16xf32>
    %72 = vector.broadcast %21 : vector<1x16xf32> to vector<8x16xf32>
    %73 = arith.mulf %47, %72 : vector<8x16xf32>
    %74 = arith.subf %18, %73 : vector<8x16xf32>
    %cst_28 = arith.constant 8.000000e-01 : f32
    %75 = vector.broadcast %cst_28 : f32 to vector<8x16xf32>
    %76 = arith.mulf %75, %74 : vector<8x16xf32>
    %77 = arith.addf %71, %76 : vector<8x16xf32>
    %cst_29 = arith.constant 0.000000e+00 : f32
    %78 = vector.broadcast %cst_29 : f32 to vector<8x16xf32>
    %79 = arith.cmpf oge, %38, %78 : vector<8x16xf32>
    %80 = arith.select %79, %18, %77 : vector<8x16xi1>, vector<8x16xf32>
    %cst_30 = arith.constant dense<0.000000e+00> : vector<3x16xf32>
    %81 = tpu.matmul %4, %58, %cst_30 {dimension_numbers = #tpu.dot_dimension_numbers<[1], [0], [0], [1], [0, 0, 1, 1], [], []>} : vector<3x8xf32>, vector<8x16xf32>, vector<3x16xf32> -> vector<3x16xf32>
    %cst_31 = arith.constant dense<0.000000e+00> : vector<3x16xf32>
    %82 = tpu.matmul %4, %69, %cst_31 {dimension_numbers = #tpu.dot_dimension_numbers<[1], [0], [0], [1], [0, 0, 1, 1], [], []>} : vector<3x8xf32>, vector<8x16xf32>, vector<3x16xf32> -> vector<3x16xf32>
    %cst_32 = arith.constant dense<0.000000e+00> : vector<3x16xf32>
    %83 = tpu.matmul %4, %80, %cst_32 {dimension_numbers = #tpu.dot_dimension_numbers<[1], [0], [0], [1], [0, 0, 1, 1], [], []>} : vector<3x8xf32>, vector<8x16xf32>, vector<3x16xf32> -> vector<3x16xf32>
    %84 = vector.extract_strided_slice %81 {offsets = [0, 0], sizes = [1, 16], strides = [1, 1]} : vector<3x16xf32> to vector<1x16xf32>
    %85 = vector.extract_strided_slice %82 {offsets = [0, 0], sizes = [1, 16], strides = [1, 1]} : vector<3x16xf32> to vector<1x16xf32>
    %86 = vector.extract_strided_slice %83 {offsets = [0, 0], sizes = [1, 16], strides = [1, 1]} : vector<3x16xf32> to vector<1x16xf32>
    %87 = vector.extract_strided_slice %81 {offsets = [1, 0], sizes = [1, 16], strides = [1, 1]} : vector<3x16xf32> to vector<1x16xf32>
    %88 = vector.extract_strided_slice %82 {offsets = [1, 0], sizes = [1, 16], strides = [1, 1]} : vector<3x16xf32> to vector<1x16xf32>
    %89 = vector.extract_strided_slice %83 {offsets = [1, 0], sizes = [1, 16], strides = [1, 1]} : vector<3x16xf32> to vector<1x16xf32>
    %90 = vector.extract_strided_slice %81 {offsets = [2, 0], sizes = [1, 16], strides = [1, 1]} : vector<3x16xf32> to vector<1x16xf32>
    %91 = vector.extract_strided_slice %82 {offsets = [2, 0], sizes = [1, 16], strides = [1, 1]} : vector<3x16xf32> to vector<1x16xf32>
    %92 = vector.extract_strided_slice %83 {offsets = [2, 0], sizes = [1, 16], strides = [1, 1]} : vector<3x16xf32> to vector<1x16xf32>
    %93 = arith.subf %84, %90 : vector<1x16xf32>
    %94 = arith.subf %85, %91 : vector<1x16xf32>
    %95 = arith.subf %86, %92 : vector<1x16xf32>
    %96 = arith.mulf %87, %93 : vector<1x16xf32>
    %97 = arith.mulf %88, %94 : vector<1x16xf32>
    %98 = arith.addf %96, %97 : vector<1x16xf32>
    %99 = arith.mulf %89, %95 : vector<1x16xf32>
    %100 = arith.addf %98, %99 : vector<1x16xf32>
    %101 = arith.mulf %87, %87 : vector<1x16xf32>
    %102 = arith.mulf %88, %88 : vector<1x16xf32>
    %103 = arith.addf %101, %102 : vector<1x16xf32>
    %104 = arith.mulf %89, %89 : vector<1x16xf32>
    %105 = arith.addf %103, %104 : vector<1x16xf32>
    %cst_33 = arith.constant 9.99999997E-7 : f32
    %106 = vector.broadcast %cst_33 : f32 to vector<1x16xf32>
    %107 = arith.addf %105, %106 : vector<1x16xf32>
    %108 = arith.divf %100, %107 : vector<1x16xf32>
    %cst_34 = arith.constant 2.000000e-01 : f32
    %109 = vector.broadcast %cst_34 : f32 to vector<1x16xf32>
    %110 = arith.mulf %109, %84 : vector<1x16xf32>
    %111 = arith.mulf %108, %87 : vector<1x16xf32>
    %112 = arith.subf %84, %111 : vector<1x16xf32>
    %cst_35 = arith.constant 8.000000e-01 : f32
    %113 = vector.broadcast %cst_35 : f32 to vector<1x16xf32>
    %114 = arith.mulf %113, %112 : vector<1x16xf32>
    %115 = arith.addf %110, %114 : vector<1x16xf32>
    %cst_36 = arith.constant 0.000000e+00 : f32
    %116 = vector.broadcast %cst_36 : f32 to vector<1x16xf32>
    %117 = arith.cmpf oge, %100, %116 : vector<1x16xf32>
    %118 = arith.select %117, %84, %115 : vector<1x16xi1>, vector<1x16xf32>
    %cst_37 = arith.constant 2.000000e-01 : f32
    %119 = vector.broadcast %cst_37 : f32 to vector<1x16xf32>
    %120 = arith.mulf %119, %85 : vector<1x16xf32>
    %121 = arith.mulf %108, %88 : vector<1x16xf32>
    %122 = arith.subf %85, %121 : vector<1x16xf32>
    %cst_38 = arith.constant 8.000000e-01 : f32
    %123 = vector.broadcast %cst_38 : f32 to vector<1x16xf32>
    %124 = arith.mulf %123, %122 : vector<1x16xf32>
    %125 = arith.addf %120, %124 : vector<1x16xf32>
    %cst_39 = arith.constant 0.000000e+00 : f32
    %126 = vector.broadcast %cst_39 : f32 to vector<1x16xf32>
    %127 = arith.cmpf oge, %100, %126 : vector<1x16xf32>
    %128 = arith.select %127, %85, %125 : vector<1x16xi1>, vector<1x16xf32>
    %cst_40 = arith.constant 2.000000e-01 : f32
    %129 = vector.broadcast %cst_40 : f32 to vector<1x16xf32>
    %130 = arith.mulf %129, %86 : vector<1x16xf32>
    %131 = arith.mulf %108, %89 : vector<1x16xf32>
    %132 = arith.subf %86, %131 : vector<1x16xf32>
    %cst_41 = arith.constant 8.000000e-01 : f32
    %133 = vector.broadcast %cst_41 : f32 to vector<1x16xf32>
    %134 = arith.mulf %133, %132 : vector<1x16xf32>
    %135 = arith.addf %130, %134 : vector<1x16xf32>
    %cst_42 = arith.constant 0.000000e+00 : f32
    %136 = vector.broadcast %cst_42 : f32 to vector<1x16xf32>
    %137 = arith.cmpf oge, %100, %136 : vector<1x16xf32>
    %138 = arith.select %137, %86, %135 : vector<1x16xi1>, vector<1x16xf32>
    %139 = vector.broadcast %118 : vector<1x16xf32> to vector<8x16xf32>
    %140 = arith.subf %58, %139 : vector<8x16xf32>
    %141 = vector.broadcast %128 : vector<1x16xf32> to vector<8x16xf32>
    %142 = arith.subf %69, %141 : vector<8x16xf32>
    %143 = vector.broadcast %138 : vector<1x16xf32> to vector<8x16xf32>
    %144 = arith.subf %80, %143 : vector<8x16xf32>
    %cst_43 = arith.constant dense<0.000000e+00> : vector<9x16xf32>
    %145 = tpu.matmul %5, %140, %cst_43 {dimension_numbers = #tpu.dot_dimension_numbers<[1], [0], [0], [1], [0, 0, 1, 1], [], []>} : vector<9x8xf32>, vector<8x16xf32>, vector<9x16xf32> -> vector<9x16xf32>
    %cst_44 = arith.constant dense<0.000000e+00> : vector<9x16xf32>
    %146 = tpu.matmul %5, %142, %cst_44 {dimension_numbers = #tpu.dot_dimension_numbers<[1], [0], [0], [1], [0, 0, 1, 1], [], []>} : vector<9x8xf32>, vector<8x16xf32>, vector<9x16xf32> -> vector<9x16xf32>
    %cst_45 = arith.constant dense<0.000000e+00> : vector<9x16xf32>
    %147 = tpu.matmul %5, %144, %cst_45 {dimension_numbers = #tpu.dot_dimension_numbers<[1], [0], [0], [1], [0, 0, 1, 1], [], []>} : vector<9x8xf32>, vector<8x16xf32>, vector<9x16xf32> -> vector<9x16xf32>
    %148 = vector.extract_strided_slice %145 {offsets = [0, 0], sizes = [8, 16], strides = [1, 1]} : vector<9x16xf32> to vector<8x16xf32>
    %149 = vector.extract_strided_slice %146 {offsets = [0, 0], sizes = [8, 16], strides = [1, 1]} : vector<9x16xf32> to vector<8x16xf32>
    %150 = vector.extract_strided_slice %147 {offsets = [0, 0], sizes = [8, 16], strides = [1, 1]} : vector<9x16xf32> to vector<8x16xf32>
    %151 = vector.extract_strided_slice %145 {offsets = [8, 0], sizes = [1, 16], strides = [1, 1]} : vector<9x16xf32> to vector<1x16xf32>
    %152 = vector.extract_strided_slice %146 {offsets = [8, 0], sizes = [1, 16], strides = [1, 1]} : vector<9x16xf32> to vector<1x16xf32>
    %153 = vector.extract_strided_slice %147 {offsets = [8, 0], sizes = [1, 16], strides = [1, 1]} : vector<9x16xf32> to vector<1x16xf32>
    %154 = vector.broadcast %151 : vector<1x16xf32> to vector<8x16xf32>
    %155 = arith.mulf %148, %154 : vector<8x16xf32>
    %156 = vector.broadcast %152 : vector<1x16xf32> to vector<8x16xf32>
    %157 = arith.mulf %149, %156 : vector<8x16xf32>
    %158 = arith.addf %155, %157 : vector<8x16xf32>
    %159 = vector.broadcast %153 : vector<1x16xf32> to vector<8x16xf32>
    %160 = arith.mulf %150, %159 : vector<8x16xf32>
    %161 = arith.addf %158, %160 : vector<8x16xf32>
    %162 = arith.mulf %151, %151 : vector<1x16xf32>
    %163 = arith.mulf %152, %152 : vector<1x16xf32>
    %164 = arith.addf %162, %163 : vector<1x16xf32>
    %165 = arith.mulf %153, %153 : vector<1x16xf32>
    %166 = arith.addf %164, %165 : vector<1x16xf32>
    %cst_46 = arith.constant 9.99999997E-7 : f32
    %167 = vector.broadcast %cst_46 : f32 to vector<1x16xf32>
    %168 = arith.addf %166, %167 : vector<1x16xf32>
    %169 = vector.broadcast %168 : vector<1x16xf32> to vector<8x16xf32>
    %170 = arith.divf %161, %169 : vector<8x16xf32>
    %cst_47 = arith.constant 2.000000e-01 : f32
    %171 = vector.broadcast %cst_47 : f32 to vector<8x16xf32>
    %172 = arith.mulf %171, %148 : vector<8x16xf32>
    %173 = vector.broadcast %151 : vector<1x16xf32> to vector<8x16xf32>
    %174 = arith.mulf %170, %173 : vector<8x16xf32>
    %175 = arith.subf %148, %174 : vector<8x16xf32>
    %cst_48 = arith.constant 8.000000e-01 : f32
    %176 = vector.broadcast %cst_48 : f32 to vector<8x16xf32>
    %177 = arith.mulf %176, %175 : vector<8x16xf32>
    %178 = arith.addf %172, %177 : vector<8x16xf32>
    %cst_49 = arith.constant 0.000000e+00 : f32
    %179 = vector.broadcast %cst_49 : f32 to vector<8x16xf32>
    %180 = arith.cmpf oge, %161, %179 : vector<8x16xf32>
    %181 = arith.select %180, %148, %178 : vector<8x16xi1>, vector<8x16xf32>
    %cst_50 = arith.constant 2.000000e-01 : f32
    %182 = vector.broadcast %cst_50 : f32 to vector<8x16xf32>
    %183 = arith.mulf %182, %149 : vector<8x16xf32>
    %184 = vector.broadcast %152 : vector<1x16xf32> to vector<8x16xf32>
    %185 = arith.mulf %170, %184 : vector<8x16xf32>
    %186 = arith.subf %149, %185 : vector<8x16xf32>
    %cst_51 = arith.constant 8.000000e-01 : f32
    %187 = vector.broadcast %cst_51 : f32 to vector<8x16xf32>
    %188 = arith.mulf %187, %186 : vector<8x16xf32>
    %189 = arith.addf %183, %188 : vector<8x16xf32>
    %cst_52 = arith.constant 0.000000e+00 : f32
    %190 = vector.broadcast %cst_52 : f32 to vector<8x16xf32>
    %191 = arith.cmpf oge, %161, %190 : vector<8x16xf32>
    %192 = arith.select %191, %149, %189 : vector<8x16xi1>, vector<8x16xf32>
    %cst_53 = arith.constant 2.000000e-01 : f32
    %193 = vector.broadcast %cst_53 : f32 to vector<8x16xf32>
    %194 = arith.mulf %193, %150 : vector<8x16xf32>
    %195 = vector.broadcast %153 : vector<1x16xf32> to vector<8x16xf32>
    %196 = arith.mulf %170, %195 : vector<8x16xf32>
    %197 = arith.subf %150, %196 : vector<8x16xf32>
    %cst_54 = arith.constant 8.000000e-01 : f32
    %198 = vector.broadcast %cst_54 : f32 to vector<8x16xf32>
    %199 = arith.mulf %198, %197 : vector<8x16xf32>
    %200 = arith.addf %194, %199 : vector<8x16xf32>
    %cst_55 = arith.constant 0.000000e+00 : f32
    %201 = vector.broadcast %cst_55 : f32 to vector<8x16xf32>
    %202 = arith.cmpf oge, %161, %201 : vector<8x16xf32>
    %203 = arith.select %202, %150, %200 : vector<8x16xi1>, vector<8x16xf32>
    %cst_56 = arith.constant dense<0.000000e+00> : vector<4x16xf32>
    %204 = tpu.matmul %6, %181, %cst_56 {dimension_numbers = #tpu.dot_dimension_numbers<[1], [0], [0], [1], [0, 0, 1, 1], [], []>} : vector<4x8xf32>, vector<8x16xf32>, vector<4x16xf32> -> vector<4x16xf32>
    %cst_57 = arith.constant dense<0.000000e+00> : vector<4x16xf32>
    %205 = tpu.matmul %6, %192, %cst_57 {dimension_numbers = #tpu.dot_dimension_numbers<[1], [0], [0], [1], [0, 0, 1, 1], [], []>} : vector<4x8xf32>, vector<8x16xf32>, vector<4x16xf32> -> vector<4x16xf32>
    %cst_58 = arith.constant dense<0.000000e+00> : vector<4x16xf32>
    %206 = tpu.matmul %6, %203, %cst_58 {dimension_numbers = #tpu.dot_dimension_numbers<[1], [0], [0], [1], [0, 0, 1, 1], [], []>} : vector<4x8xf32>, vector<8x16xf32>, vector<4x16xf32> -> vector<4x16xf32>
    %207 = vector.extract_strided_slice %204 {offsets = [0, 0], sizes = [3, 16], strides = [1, 1]} : vector<4x16xf32> to vector<3x16xf32>
    %208 = vector.extract_strided_slice %205 {offsets = [0, 0], sizes = [3, 16], strides = [1, 1]} : vector<4x16xf32> to vector<3x16xf32>
    %209 = vector.extract_strided_slice %206 {offsets = [0, 0], sizes = [3, 16], strides = [1, 1]} : vector<4x16xf32> to vector<3x16xf32>
    %210 = vector.extract_strided_slice %204 {offsets = [3, 0], sizes = [1, 16], strides = [1, 1]} : vector<4x16xf32> to vector<1x16xf32>
    %211 = vector.extract_strided_slice %205 {offsets = [3, 0], sizes = [1, 16], strides = [1, 1]} : vector<4x16xf32> to vector<1x16xf32>
    %212 = vector.extract_strided_slice %206 {offsets = [3, 0], sizes = [1, 16], strides = [1, 1]} : vector<4x16xf32> to vector<1x16xf32>
    %213 = vector.broadcast %210 : vector<1x16xf32> to vector<3x16xf32>
    %214 = arith.mulf %207, %213 : vector<3x16xf32>
    %215 = vector.broadcast %211 : vector<1x16xf32> to vector<3x16xf32>
    %216 = arith.mulf %208, %215 : vector<3x16xf32>
    %217 = arith.addf %214, %216 : vector<3x16xf32>
    %218 = vector.broadcast %212 : vector<1x16xf32> to vector<3x16xf32>
    %219 = arith.mulf %209, %218 : vector<3x16xf32>
    %220 = arith.addf %217, %219 : vector<3x16xf32>
    %221 = arith.mulf %210, %210 : vector<1x16xf32>
    %222 = arith.mulf %211, %211 : vector<1x16xf32>
    %223 = arith.addf %221, %222 : vector<1x16xf32>
    %224 = arith.mulf %212, %212 : vector<1x16xf32>
    %225 = arith.addf %223, %224 : vector<1x16xf32>
    %cst_59 = arith.constant 9.99999997E-7 : f32
    %226 = vector.broadcast %cst_59 : f32 to vector<1x16xf32>
    %227 = arith.addf %225, %226 : vector<1x16xf32>
    %228 = vector.broadcast %227 : vector<1x16xf32> to vector<3x16xf32>
    %229 = arith.divf %220, %228 : vector<3x16xf32>
    %cst_60 = arith.constant 2.000000e-01 : f32
    %230 = vector.broadcast %cst_60 : f32 to vector<3x16xf32>
    %231 = arith.mulf %230, %207 : vector<3x16xf32>
    %232 = vector.broadcast %210 : vector<1x16xf32> to vector<3x16xf32>
    %233 = arith.mulf %229, %232 : vector<3x16xf32>
    %234 = arith.subf %207, %233 : vector<3x16xf32>
    %cst_61 = arith.constant 8.000000e-01 : f32
    %235 = vector.broadcast %cst_61 : f32 to vector<3x16xf32>
    %236 = arith.mulf %235, %234 : vector<3x16xf32>
    %237 = arith.addf %231, %236 : vector<3x16xf32>
    %cst_62 = arith.constant 0.000000e+00 : f32
    %238 = vector.broadcast %cst_62 : f32 to vector<3x16xf32>
    %239 = arith.cmpf oge, %220, %238 : vector<3x16xf32>
    %240 = arith.select %239, %207, %237 : vector<3x16xi1>, vector<3x16xf32>
    %cst_63 = arith.constant 2.000000e-01 : f32
    %241 = vector.broadcast %cst_63 : f32 to vector<3x16xf32>
    %242 = arith.mulf %241, %208 : vector<3x16xf32>
    %243 = vector.broadcast %211 : vector<1x16xf32> to vector<3x16xf32>
    %244 = arith.mulf %229, %243 : vector<3x16xf32>
    %245 = arith.subf %208, %244 : vector<3x16xf32>
    %cst_64 = arith.constant 8.000000e-01 : f32
    %246 = vector.broadcast %cst_64 : f32 to vector<3x16xf32>
    %247 = arith.mulf %246, %245 : vector<3x16xf32>
    %248 = arith.addf %242, %247 : vector<3x16xf32>
    %cst_65 = arith.constant 0.000000e+00 : f32
    %249 = vector.broadcast %cst_65 : f32 to vector<3x16xf32>
    %250 = arith.cmpf oge, %220, %249 : vector<3x16xf32>
    %251 = arith.select %250, %208, %248 : vector<3x16xi1>, vector<3x16xf32>
    %cst_66 = arith.constant 2.000000e-01 : f32
    %252 = vector.broadcast %cst_66 : f32 to vector<3x16xf32>
    %253 = arith.mulf %252, %209 : vector<3x16xf32>
    %254 = vector.broadcast %212 : vector<1x16xf32> to vector<3x16xf32>
    %255 = arith.mulf %229, %254 : vector<3x16xf32>
    %256 = arith.subf %209, %255 : vector<3x16xf32>
    %cst_67 = arith.constant 8.000000e-01 : f32
    %257 = vector.broadcast %cst_67 : f32 to vector<3x16xf32>
    %258 = arith.mulf %257, %256 : vector<3x16xf32>
    %259 = arith.addf %253, %258 : vector<3x16xf32>
    %cst_68 = arith.constant 0.000000e+00 : f32
    %260 = vector.broadcast %cst_68 : f32 to vector<3x16xf32>
    %261 = arith.cmpf oge, %220, %260 : vector<3x16xf32>
    %262 = arith.select %261, %209, %259 : vector<3x16xi1>, vector<3x16xf32>
    %c0_69 = arith.constant 0 : index
    %c0_70 = arith.constant 0 : index
    %c0_71 = arith.constant 0 : index
    %c0_72 = arith.constant 0 : index
    %263 = vector.load %arg7[%c0_69, %c0_70, %c0_71, %c0_72] : memref<1x3x8x16xf32, #tpu.memory_space<vmem>>, vector<1x1x8x16xf32>
    %264 = vector.shape_cast %263 : vector<1x1x8x16xf32> to vector<8x16xf32>
    %265 = vector.shape_cast %58 : vector<8x16xf32> to vector<1x1x8x16xf32>
    tpu.vector_store %arg7[%c0_69, %c0_70, %c0_71, %c0_72], %265 {strides = array<i32>} : memref<1x3x8x16xf32, #tpu.memory_space<vmem>>, vector<1x1x8x16xf32>,
    %c0_73 = arith.constant 0 : index
    %c0_74 = arith.constant 0 : index
    %c0_75 = arith.constant 0 : index
    %c0_76 = arith.constant 0 : index
    %266 = vector.load %arg9[%c0_73, %c0_74, %c0_75, %c0_76] : memref<1x3x8x1xf32, #tpu.memory_space<vmem>>, vector<1x1x8x1xf32>
    %267 = vector.shape_cast %266 : vector<1x1x8x1xf32> to vector<8x1xf32>
    %cst_77 = arith.constant dense<0.000000e+00> : vector<8xf32>
    %268 = vector.multi_reduction <add>, %58, %cst_77 [1] : vector<8x16xf32> to vector<8xf32>
    %269 = vector.shape_cast %268 : vector<8xf32> to vector<8x1xf32>
    %270 = arith.addf %267, %269 : vector<8x1xf32>
    %c0_78 = arith.constant 0 : index
    %c0_79 = arith.constant 0 : index
    %c0_80 = arith.constant 0 : index
    %c0_81 = arith.constant 0 : index
    %271 = vector.load %arg9[%c0_78, %c0_79, %c0_80, %c0_81] : memref<1x3x8x1xf32, #tpu.memory_space<vmem>>, vector<1x1x8x1xf32>
    %272 = vector.shape_cast %271 : vector<1x1x8x1xf32> to vector<8x1xf32>
    %273 = vector.shape_cast %270 : vector<8x1xf32> to vector<1x1x8x1xf32>
    tpu.vector_store %arg9[%c0_78, %c0_79, %c0_80, %c0_81], %273 {strides = array<i32>} : memref<1x3x8x1xf32, #tpu.memory_space<vmem>>, vector<1x1x8x1xf32>,
    %c0_82 = arith.constant 0 : index
    %c1_83 = arith.constant 1 : index
    %c0_84 = arith.constant 0 : index
    %c0_85 = arith.constant 0 : index
    %274 = vector.load %arg7[%c0_82, %c1_83, %c0_84, %c0_85] : memref<1x3x8x16xf32, #tpu.memory_space<vmem>>, vector<1x1x8x16xf32>
    %275 = vector.shape_cast %274 : vector<1x1x8x16xf32> to vector<8x16xf32>
    %276 = vector.shape_cast %69 : vector<8x16xf32> to vector<1x1x8x16xf32>
    tpu.vector_store %arg7[%c0_82, %c1_83, %c0_84, %c0_85], %276 {strides = array<i32>} : memref<1x3x8x16xf32, #tpu.memory_space<vmem>>, vector<1x1x8x16xf32>,
    %c0_86 = arith.constant 0 : index
    %c1_87 = arith.constant 1 : index
    %c0_88 = arith.constant 0 : index
    %c0_89 = arith.constant 0 : index
    %277 = vector.load %arg9[%c0_86, %c1_87, %c0_88, %c0_89] : memref<1x3x8x1xf32, #tpu.memory_space<vmem>>, vector<1x1x8x1xf32>
    %278 = vector.shape_cast %277 : vector<1x1x8x1xf32> to vector<8x1xf32>
    %cst_90 = arith.constant dense<0.000000e+00> : vector<8xf32>
    %279 = vector.multi_reduction <add>, %69, %cst_90 [1] : vector<8x16xf32> to vector<8xf32>
    %280 = vector.shape_cast %279 : vector<8xf32> to vector<8x1xf32>
    %281 = arith.addf %278, %280 : vector<8x1xf32>
    %c0_91 = arith.constant 0 : index
    %c1_92 = arith.constant 1 : index
    %c0_93 = arith.constant 0 : index
    %c0_94 = arith.constant 0 : index
    %282 = vector.load %arg9[%c0_91, %c1_92, %c0_93, %c0_94] : memref<1x3x8x1xf32, #tpu.memory_space<vmem>>, vector<1x1x8x1xf32>
    %283 = vector.shape_cast %282 : vector<1x1x8x1xf32> to vector<8x1xf32>
    %284 = vector.shape_cast %281 : vector<8x1xf32> to vector<1x1x8x1xf32>
    tpu.vector_store %arg9[%c0_91, %c1_92, %c0_93, %c0_94], %284 {strides = array<i32>} : memref<1x3x8x1xf32, #tpu.memory_space<vmem>>, vector<1x1x8x1xf32>,
    %c0_95 = arith.constant 0 : index
    %c2_96 = arith.constant 2 : index
    %c0_97 = arith.constant 0 : index
    %c0_98 = arith.constant 0 : index
    %285 = vector.load %arg7[%c0_95, %c2_96, %c0_97, %c0_98] : memref<1x3x8x16xf32, #tpu.memory_space<vmem>>, vector<1x1x8x16xf32>
    %286 = vector.shape_cast %285 : vector<1x1x8x16xf32> to vector<8x16xf32>
    %287 = vector.shape_cast %80 : vector<8x16xf32> to vector<1x1x8x16xf32>
    tpu.vector_store %arg7[%c0_95, %c2_96, %c0_97, %c0_98], %287 {strides = array<i32>} : memref<1x3x8x16xf32, #tpu.memory_space<vmem>>, vector<1x1x8x16xf32>,
    %c0_99 = arith.constant 0 : index
    %c2_100 = arith.constant 2 : index
    %c0_101 = arith.constant 0 : index
    %c0_102 = arith.constant 0 : index
    %288 = vector.load %arg9[%c0_99, %c2_100, %c0_101, %c0_102] : memref<1x3x8x1xf32, #tpu.memory_space<vmem>>, vector<1x1x8x1xf32>
    %289 = vector.shape_cast %288 : vector<1x1x8x1xf32> to vector<8x1xf32>
    %cst_103 = arith.constant dense<0.000000e+00> : vector<8xf32>
    %290 = vector.multi_reduction <add>, %80, %cst_103 [1] : vector<8x16xf32> to vector<8xf32>
    %291 = vector.shape_cast %290 : vector<8xf32> to vector<8x1xf32>
    %292 = arith.addf %289, %291 : vector<8x1xf32>
    %c0_104 = arith.constant 0 : index
    %c2_105 = arith.constant 2 : index
    %c0_106 = arith.constant 0 : index
    %c0_107 = arith.constant 0 : index
    %293 = vector.load %arg9[%c0_104, %c2_105, %c0_106, %c0_107] : memref<1x3x8x1xf32, #tpu.memory_space<vmem>>, vector<1x1x8x1xf32>
    %294 = vector.shape_cast %293 : vector<1x1x8x1xf32> to vector<8x1xf32>
    %295 = vector.shape_cast %292 : vector<8x1xf32> to vector<1x1x8x1xf32>
    tpu.vector_store %arg9[%c0_104, %c2_105, %c0_106, %c0_107], %295 {strides = array<i32>} : memref<1x3x8x1xf32, #tpu.memory_space<vmem>>, vector<1x1x8x1xf32>,
    %296 = vector.extract_strided_slice %240 {offsets = [0, 0], sizes = [1, 16], strides = [1, 1]} : vector<3x16xf32> to vector<1x16xf32>
    %297 = vector.broadcast %296 : vector<1x16xf32> to vector<8x16xf32>
    %298 = arith.mulf %181, %297 : vector<8x16xf32>
    %299 = vector.extract_strided_slice %251 {offsets = [0, 0], sizes = [1, 16], strides = [1, 1]} : vector<3x16xf32> to vector<1x16xf32>
    %300 = vector.broadcast %299 : vector<1x16xf32> to vector<8x16xf32>
    %301 = arith.mulf %192, %300 : vector<8x16xf32>
    %302 = arith.addf %298, %301 : vector<8x16xf32>
    %303 = vector.extract_strided_slice %262 {offsets = [0, 0], sizes = [1, 16], strides = [1, 1]} : vector<3x16xf32> to vector<1x16xf32>
    %304 = vector.broadcast %303 : vector<1x16xf32> to vector<8x16xf32>
    %305 = arith.mulf %203, %304 : vector<8x16xf32>
    %306 = arith.addf %302, %305 : vector<8x16xf32>
    %c0_108 = arith.constant 0 : index
    %c0_109 = arith.constant 0 : index
    %c0_110 = arith.constant 0 : index
    %c0_111 = arith.constant 0 : index
    %307 = vector.load %arg8[%c0_108, %c0_109, %c0_110, %c0_111] : memref<1x3x8x16xf32, #tpu.memory_space<vmem>>, vector<1x1x8x16xf32>
    %308 = vector.shape_cast %307 : vector<1x1x8x16xf32> to vector<8x16xf32>
    %309 = vector.shape_cast %306 : vector<8x16xf32> to vector<1x1x8x16xf32>
    tpu.vector_store %arg8[%c0_108, %c0_109, %c0_110, %c0_111], %309 {strides = array<i32>} : memref<1x3x8x16xf32, #tpu.memory_space<vmem>>, vector<1x1x8x16xf32>,
    %c0_112 = arith.constant 0 : index
    %c0_113 = arith.constant 0 : index
    %c0_114 = arith.constant 0 : index
    %c0_115 = arith.constant 0 : index
    %310 = vector.load %arg10[%c0_112, %c0_113, %c0_114, %c0_115] : memref<1x3x8x1xf32, #tpu.memory_space<vmem>>, vector<1x1x8x1xf32>
    %311 = vector.shape_cast %310 : vector<1x1x8x1xf32> to vector<8x1xf32>
    %cst_116 = arith.constant dense<0.000000e+00> : vector<8xf32>
    %312 = vector.multi_reduction <add>, %306, %cst_116 [1] : vector<8x16xf32> to vector<8xf32>
    %313 = vector.shape_cast %312 : vector<8xf32> to vector<8x1xf32>
    %314 = arith.addf %311, %313 : vector<8x1xf32>
    %c0_117 = arith.constant 0 : index
    %c0_118 = arith.constant 0 : index
    %c0_119 = arith.constant 0 : index
    %c0_120 = arith.constant 0 : index
    %315 = vector.load %arg10[%c0_117, %c0_118, %c0_119, %c0_120] : memref<1x3x8x1xf32, #tpu.memory_space<vmem>>, vector<1x1x8x1xf32>
    %316 = vector.shape_cast %315 : vector<1x1x8x1xf32> to vector<8x1xf32>
    %317 = vector.shape_cast %314 : vector<8x1xf32> to vector<1x1x8x1xf32>
    tpu.vector_store %arg10[%c0_117, %c0_118, %c0_119, %c0_120], %317 {strides = array<i32>} : memref<1x3x8x1xf32, #tpu.memory_space<vmem>>, vector<1x1x8x1xf32>,
    %318 = vector.extract_strided_slice %240 {offsets = [1, 0], sizes = [1, 16], strides = [1, 1]} : vector<3x16xf32> to vector<1x16xf32>
    %319 = vector.broadcast %318 : vector<1x16xf32> to vector<8x16xf32>
    %320 = arith.mulf %181, %319 : vector<8x16xf32>
    %321 = vector.extract_strided_slice %251 {offsets = [1, 0], sizes = [1, 16], strides = [1, 1]} : vector<3x16xf32> to vector<1x16xf32>
    %322 = vector.broadcast %321 : vector<1x16xf32> to vector<8x16xf32>
    %323 = arith.mulf %192, %322 : vector<8x16xf32>
    %324 = arith.addf %320, %323 : vector<8x16xf32>
    %325 = vector.extract_strided_slice %262 {offsets = [1, 0], sizes = [1, 16], strides = [1, 1]} : vector<3x16xf32> to vector<1x16xf32>
    %326 = vector.broadcast %325 : vector<1x16xf32> to vector<8x16xf32>
    %327 = arith.mulf %203, %326 : vector<8x16xf32>
    %328 = arith.addf %324, %327 : vector<8x16xf32>
    %c0_121 = arith.constant 0 : index
    %c1_122 = arith.constant 1 : index
    %c0_123 = arith.constant 0 : index
    %c0_124 = arith.constant 0 : index
    %329 = vector.load %arg8[%c0_121, %c1_122, %c0_123, %c0_124] : memref<1x3x8x16xf32, #tpu.memory_space<vmem>>, vector<1x1x8x16xf32>
    %330 = vector.shape_cast %329 : vector<1x1x8x16xf32> to vector<8x16xf32>
    %331 = vector.shape_cast %328 : vector<8x16xf32> to vector<1x1x8x16xf32>
    tpu.vector_store %arg8[%c0_121, %c1_122, %c0_123, %c0_124], %331 {strides = array<i32>} : memref<1x3x8x16xf32, #tpu.memory_space<vmem>>, vector<1x1x8x16xf32>,
    %c0_125 = arith.constant 0 : index
    %c1_126 = arith.constant 1 : index
    %c0_127 = arith.constant 0 : index
    %c0_128 = arith.constant 0 : index
    %332 = vector.load %arg10[%c0_125, %c1_126, %c0_127, %c0_128] : memref<1x3x8x1xf32, #tpu.memory_space<vmem>>, vector<1x1x8x1xf32>
    %333 = vector.shape_cast %332 : vector<1x1x8x1xf32> to vector<8x1xf32>
    %cst_129 = arith.constant dense<0.000000e+00> : vector<8xf32>
    %334 = vector.multi_reduction <add>, %328, %cst_129 [1] : vector<8x16xf32> to vector<8xf32>
    %335 = vector.shape_cast %334 : vector<8xf32> to vector<8x1xf32>
    %336 = arith.addf %333, %335 : vector<8x1xf32>
    %c0_130 = arith.constant 0 : index
    %c1_131 = arith.constant 1 : index
    %c0_132 = arith.constant 0 : index
    %c0_133 = arith.constant 0 : index
    %337 = vector.load %arg10[%c0_130, %c1_131, %c0_132, %c0_133] : memref<1x3x8x1xf32, #tpu.memory_space<vmem>>, vector<1x1x8x1xf32>
    %338 = vector.shape_cast %337 : vector<1x1x8x1xf32> to vector<8x1xf32>
    %339 = vector.shape_cast %336 : vector<8x1xf32> to vector<1x1x8x1xf32>
    tpu.vector_store %arg10[%c0_130, %c1_131, %c0_132, %c0_133], %339 {strides = array<i32>} : memref<1x3x8x1xf32, #tpu.memory_space<vmem>>, vector<1x1x8x1xf32>,
    %340 = vector.extract_strided_slice %240 {offsets = [2, 0], sizes = [1, 16], strides = [1, 1]} : vector<3x16xf32> to vector<1x16xf32>
    %341 = vector.broadcast %340 : vector<1x16xf32> to vector<8x16xf32>
    %342 = arith.mulf %181, %341 : vector<8x16xf32>
    %343 = vector.extract_strided_slice %251 {offsets = [2, 0], sizes = [1, 16], strides = [1, 1]} : vector<3x16xf32> to vector<1x16xf32>
    %344 = vector.broadcast %343 : vector<1x16xf32> to vector<8x16xf32>
    %345 = arith.mulf %192, %344 : vector<8x16xf32>
    %346 = arith.addf %342, %345 : vector<8x16xf32>
    %347 = vector.extract_strided_slice %262 {offsets = [2, 0], sizes = [1, 16], strides = [1, 1]} : vector<3x16xf32> to vector<1x16xf32>
    %348 = vector.broadcast %347 : vector<1x16xf32> to vector<8x16xf32>
    %349 = arith.mulf %203, %348 : vector<8x16xf32>
    %350 = arith.addf %346, %349 : vector<8x16xf32>
    %c0_134 = arith.constant 0 : index
    %c2_135 = arith.constant 2 : index
    %c0_136 = arith.constant 0 : index
    %c0_137 = arith.constant 0 : index
    %351 = vector.load %arg8[%c0_134, %c2_135, %c0_136, %c0_137] : memref<1x3x8x16xf32, #tpu.memory_space<vmem>>, vector<1x1x8x16xf32>
    %352 = vector.shape_cast %351 : vector<1x1x8x16xf32> to vector<8x16xf32>
    %353 = vector.shape_cast %350 : vector<8x16xf32> to vector<1x1x8x16xf32>
    tpu.vector_store %arg8[%c0_134, %c2_135, %c0_136, %c0_137], %353 {strides = array<i32>} : memref<1x3x8x16xf32, #tpu.memory_space<vmem>>, vector<1x1x8x16xf32>,
    %c0_138 = arith.constant 0 : index
    %c2_139 = arith.constant 2 : index
    %c0_140 = arith.constant 0 : index
    %c0_141 = arith.constant 0 : index
    %354 = vector.load %arg10[%c0_138, %c2_139, %c0_140, %c0_141] : memref<1x3x8x1xf32, #tpu.memory_space<vmem>>, vector<1x1x8x1xf32>
    %355 = vector.shape_cast %354 : vector<1x1x8x1xf32> to vector<8x1xf32>
    %cst_142 = arith.constant dense<0.000000e+00> : vector<8xf32>
    %356 = vector.multi_reduction <add>, %350, %cst_142 [1] : vector<8x16xf32> to vector<8xf32>
    %357 = vector.shape_cast %356 : vector<8xf32> to vector<8x1xf32>
    %358 = arith.addf %355, %357 : vector<8x1xf32>
    %c0_143 = arith.constant 0 : index
    %c2_144 = arith.constant 2 : index
    %c0_145 = arith.constant 0 : index
    %c0_146 = arith.constant 0 : index
    %359 = vector.load %arg10[%c0_143, %c2_144, %c0_145, %c0_146] : memref<1x3x8x1xf32, #tpu.memory_space<vmem>>, vector<1x1x8x1xf32>
    %360 = vector.shape_cast %359 : vector<1x1x8x1xf32> to vector<8x1xf32>
    %361 = vector.shape_cast %358 : vector<8x1xf32> to vector<1x1x8x1xf32>
    tpu.vector_store %arg10[%c0_143, %c2_144, %c0_145, %c0_146], %361 {strides = array<i32>} : memref<1x3x8x1xf32, #tpu.memory_space<vmem>>, vector<1x1x8x1xf32>,
    %c0_i32_147 = arith.constant 0 : i32
    %362 = arith.cmpi eq, %arg1, %c0_i32_147 : i32
    %363 = arith.extui %362 : i1 to i32
    %c0_i32_148 = arith.constant 0 : i32
    %364 = arith.cmpi ne, %363, %c0_i32_148 : i32
    scf.if %364 {
      %c0_149 = arith.constant 0 : index
      %c0_150 = arith.constant 0 : index
      %c0_151 = arith.constant 0 : index
      %c0_152 = arith.constant 0 : index
      %365 = vector.load %arg9[%c0_149, %c0_150, %c0_151, %c0_152] : memref<1x3x8x1xf32, #tpu.memory_space<vmem>>, vector<1x3x8x1xf32>
      %cst_153 = arith.constant 6.250000e-02 : f32
      %366 = vector.broadcast %cst_153 : f32 to vector<1x3x8x1xf32>
      %367 = arith.mulf %365, %366 : vector<1x3x8x1xf32>
      %c0_154 = arith.constant 0 : index
      %c0_155 = arith.constant 0 : index
      %c0_156 = arith.constant 0 : index
      %c0_157 = arith.constant 0 : index
      %368 = vector.load %arg9[%c0_154, %c0_155, %c0_156, %c0_157] : memref<1x3x8x1xf32, #tpu.memory_space<vmem>>, vector<1x3x8x1xf32>
      tpu.vector_store %arg9[%c0_154, %c0_155, %c0_156, %c0_157], %367 {strides = array<i32>} : memref<1x3x8x1xf32, #tpu.memory_space<vmem>>, vector<1x3x8x1xf32>,
      %c0_158 = arith.constant 0 : index
      %c0_159 = arith.constant 0 : index
      %c0_160 = arith.constant 0 : index
      %c0_161 = arith.constant 0 : index
      %369 = vector.load %arg10[%c0_158, %c0_159, %c0_160, %c0_161] : memref<1x3x8x1xf32, #tpu.memory_space<vmem>>, vector<1x3x8x1xf32>
      %cst_162 = arith.constant 6.250000e-02 : f32
      %370 = vector.broadcast %cst_162 : f32 to vector<1x3x8x1xf32>
      %371 = arith.mulf %369, %370 : vector<1x3x8x1xf32>
      %c0_163 = arith.constant 0 : index
      %c0_164 = arith.constant 0 : index
      %c0_165 = arith.constant 0 : index
      %c0_166 = arith.constant 0 : index
      %372 = vector.load %arg10[%c0_163, %c0_164, %c0_165, %c0_166] : memref<1x3x8x1xf32, #tpu.memory_space<vmem>>, vector<1x3x8x1xf32>
      tpu.vector_store %arg10[%c0_163, %c0_164, %c0_165, %c0_166], %371 {strides = array<i32>} : memref<1x3x8x1xf32, #tpu.memory_space<vmem>>, vector<1x3x8x1xf32>,
    } else {
    }
    return
  }
  func.func @transform_0(%arg0: i32, %arg1: i32) -> (i32, i32, i32, i32) {
    %c0_i32 = arith.constant 0 : i32
    %c0_i32_0 = arith.constant 0 : i32
    %c0_i32_1 = arith.constant 0 : i32
    return %arg0, %c0_i32, %c0_i32_0, %arg1 : i32, i32, i32, i32
  }
  func.func @transform_1(%arg0: i32, %arg1: i32) -> (i32, i32) {
    %c0_i32 = arith.constant 0 : i32
    %c0_i32_0 = arith.constant 0 : i32
    %c0_i32_1 = arith.constant 0 : i32
    return %c0_i32, %c0_i32_0 : i32, i32
  }
  func.func @transform_2(%arg0: i32, %arg1: i32) -> (i32, i32) {
    %c0_i32 = arith.constant 0 : i32
    %c0_i32_0 = arith.constant 0 : i32
    %c0_i32_1 = arith.constant 0 : i32
    return %c0_i32, %c0_i32_0 : i32, i32
  }
  func.func @transform_3(%arg0: i32, %arg1: i32) -> (i32, i32) {
    %c0_i32 = arith.constant 0 : i32
    %c0_i32_0 = arith.constant 0 : i32
    %c0_i32_1 = arith.constant 0 : i32
    return %c0_i32, %c0_i32_0 : i32, i32
  }
  func.func @transform_4(%arg0: i32, %arg1: i32) -> (i32, i32) {
    %c0_i32 = arith.constant 0 : i32
    %c0_i32_0 = arith.constant 0 : i32
    %c0_i32_1 = arith.constant 0 : i32
    return %c0_i32, %c0_i32_0 : i32, i32
  }
  func.func @transform_5(%arg0: i32, %arg1: i32) -> (i32, i32, i32, i32) {
    %c0_i32 = arith.constant 0 : i32
    %c0_i32_0 = arith.constant 0 : i32
    %c0_i32_1 = arith.constant 0 : i32
    return %arg0, %c0_i32, %c0_i32_0, %arg1 : i32, i32, i32, i32
  }
  func.func @transform_6(%arg0: i32, %arg1: i32) -> (i32, i32, i32, i32) {
    %c0_i32 = arith.constant 0 : i32
    %c0_i32_0 = arith.constant 0 : i32
    %c0_i32_1 = arith.constant 0 : i32
    return %arg0, %c0_i32, %c0_i32_0, %arg1 : i32, i32, i32, i32
  }
  func.func @transform_7(%arg0: i32, %arg1: i32) -> (i32, i32, i32, i32) {
    %c0_i32 = arith.constant 0 : i32
    %c0_i32_0 = arith.constant 0 : i32
    %c0_i32_1 = arith.constant 0 : i32
    %c0_i32_2 = arith.constant 0 : i32
    return %arg0, %c0_i32, %c0_i32_0, %c0_i32_1 : i32, i32, i32, i32
  }
  func.func @transform_8(%arg0: i32, %arg1: i32) -> (i32, i32, i32, i32) {
    %c0_i32 = arith.constant 0 : i32
    %c0_i32_0 = arith.constant 0 : i32
    %c0_i32_1 = arith.constant 0 : i32
    %c0_i32_2 = arith.constant 0 : i32
    return %arg0, %c0_i32, %c0_i32_0, %c0_i32_1 : i32, i32, i32, i32
  }
}

</mosaic_0001>

<bundles_post_ra>
// kernel: tpu_custom_call.1
= control target key start
LH: loop header
LB: loop body
LE: loop exit
PB: predicated region body
PF: predicated region fallthrough
CT: control target
= control target key end

     0   :  { %s2625_s0 = inlined_call_operand.vmem [shape: f32[2,3,4,16], index: 0, kind: input, shape index: {}]   ;;  %s2626_s1 = inlined_call_operand.vmem [shape: f32[10,4], index: 1, kind: input, shape index: {}]   ;;  %s2627_s2 = inlined_call_operand.vmem [shape: f32[3,8], index: 2, kind: input, shape index: {}]   ;;  %s2628_s3 = inlined_call_operand.vmem [shape: f32[9,8], index: 3, kind: input, shape index: {}]   ;;  %s2629_s4 = inlined_call_operand.vmem [shape: f32[4,8], index: 4, kind: input, shape index: {}]   ;;  %s2630_s5 = inlined_call_operand.hbm [shape: f32[2,3,8,16], index: 5, kind: output, shape index: {0}]   ;;  %s2631_s6 = inlined_call_operand.hbm [shape: f32[2,3,8,16], index: 6, kind: output, shape index: {1}]   ;;  %s2632_s7 = inlined_call_operand.vmem [shape: f32[2,3,8,1], index: 7, kind: output, shape index: {2}]   ;;  %s2633_s8 = inlined_call_operand.vmem [shape: f32[2,3,8,1], index: 8, kind: output, shape index: {3}]  }
   0x1   :  { %2635 = sst [smem:[#allocation8_spill]] %s2625_s0 }
   0x2   :  { %2636 = sst [smem:[#allocation9_spill]] %s2626_s1 }
   0x3   :  { %2637 = sst [smem:[#allocation10_spill]] %s2627_s2 }
   0x4   :  { %2638 = sst [smem:[#allocation11_spill]] %s2628_s3 }
   0x5   :  { %2639 = sst [smem:[#allocation12_spill]] %s2629_s4 }
   0x6   :  { %14 = vsyncpa [#allocation3], 0 }
   0x7   :  { %16 = vsyncpa [#allocation3 + $0x1], 0 }
   0x8   :  { %17 = vsyncpa [#allocation5], 0 }
   0x9   :  { %19 = vsyncpa [#allocation5 + $0x1], 0  ;;  %s2255_s27 = smov 0   ;;  %s2257_s28 = smov 0  }
   0xa   :  { %s2259_s29 = smov 0   ;;  %s2261_s30 = smov 0  }
   0xb   :  { %s2263_s9 = smov 0   ;;  %s2265_s10 = smov 0  }
   0xc LB: > { %s1878_s11 = sadd.s32 4294967295, %s2202_s10   ;;  %s1879_s12 = sadd.s32 4294967294, %s2202_s10   ;;  %s2202_s10 = sphi %s2265_s10, %s25_s10   ;;  %s2198_s9 = sphi %s2263_s9, %s2653_s9   ;;  %s2194_s30 = sphi %s2261_s30, %s2652_s30   ;;  %s2190_s29 = sphi %s2259_s29, %s2651_s29   ;;  %s2186_s28 = sphi %s2257_s28, %s2650_s28   ;;  %s2182_s27 = sphi %s2255_s27, %s2649_s27  }
   0xd   : > { %s37_s13 = sadd.s32 1, %s2198_s9  ;;  %s158_s14 = sadd.s32 1, %s2190_s29 }
   0xe   : > { %p39_p0 = scmp.ge.s32.totalorder %s37_s13, 2  ;;  %p168_p1 = scmp.ne.s32.totalorder %s2190_s29, %s2186_s28 }
   0xf   : > { %p169_p2 = scmp.eq.s32.totalorder %s1878_s11, 1  ;;  %p174_p3 = scmp.ne.s32.totalorder %s2186_s28, %s2182_s27 }
  0x10   : > { %s2655_s13 = smov (%p39_p0, %s37_s13), 0  ;;  %p175_p5 = scmp.eq.s32.totalorder %s1879_s12, 1 }
  0x11   : > { %p2295_p4 = por %p169_p2, %p168_p1  ;;  %s153_s16 = ssub.s32 %s2198_s9, %s2655_s13 }
  0x12   : > { %p1882_p6 = scmp.ge.s32.totalorder %s2202_s10, 1  ;;  %p156_p7 = scmp.eq.s32.totalorder %s153_s16, 0 }
  0x13   : > { %p2302_p8 = por %p175_p5, %p174_p3  ;;  %p296_p9 = scmp.lt.s32.totalorder %s2202_s10, 3 }
  0x14   : > { %s2308_s18 = scalar_select %p156_p7, %s2190_s29, %s158_s14  }
  0x15   : > { %p297_p10 = pnand %p1882_p6, %p296_p9 }
  0x16   : > { %p348_p11 = scmp.lt.s32.totalorder (!%p297_p10), %s2194_s30, 1  ;;  %s2642_s1 = sld [smem:[#allocation9_spill]] (!%p297_p10)  ;;  %vm388_vm0 = vcmask (!%p297_p10), 31744   ;;  %vm395_vm1 = vcmask (!%p297_p10), 1043456   ;;  %v2204_v5 = vmov (!%p297_p10), 0.0   ;;  %vm2205_vm2 = vmmov (!%p297_p10), 0  }
  0x17   : > { %300 = sbr.rel (%p297_p10) target bundleno = 1202 (0x4b2), region = 40  ;;  %s2643_s0 = sld [smem:[#allocation8_spill]] (!%p297_p10)  ;;  %vm370_vm3 = vcmask (!%p297_p10), 7168   ;;  %v630_v6 = vlaneseq (!%p297_p10)  ;;  %vm1539_vm4 = vcmask (!%p297_p10), 130048   ;;  %vm693_vm6 = vcmask (!%p297_p10), 64512  }
  0x18   : > { %s2644_s2 = sld [smem:[#allocation10_spill]] (!%p297_p10)  ;;  %s2645_s3 = sld [smem:[#allocation11_spill]] (!%p297_p10) }
  0x19   : > { %v2361_v7 = vshrl.u32 (!%p297_p10), %v630_v6, 7  ;;  %s2646_s4 = sld [smem:[#allocation12_spill]] (!%p297_p10) }
  0x1b   : > { %v2364_v8 = vsub.s32 (!%p297_p10), 1, %v2361_v7  ;;  %v2367_v9 = vsub.s32 (!%p297_p10), 0, %v2361_v7 }
  0x1c   : > { %v377_v0 = vld [vmem:[%s2642_s1] sm:$0xff] (!%p297_p10)  ;;  %v378_v3 = vld [vmem:[%s2642_s1 + $0x8] sm:$0x3] (!%p297_p10) }
  0x1d   : > { %1957 = vmatprep.mubr.msk.f32.mxu0 (!%p297_p10), %vm388_vm0, %v377_v0  ;;  %1962 = vmatprep.mubr.msk.f32.mxu1 (!%p297_p10), %vm388_vm0, %v377_v0 }
  0x1e   : > { %s349_s21 = scalar_select %p348_p11, %s2194_s30, 1  ;;  %v379_v54 = vld [vmem:[%s2644_s2] sm:$0x7] }
  0x1f   : > { %v2420_v61 = vld [vmem:[%s2645_s3] sm:$0xff] }
  0x20   : > { %s2016_s22 = smul.u32 12, %s349_s21 }
  0x21   : > { %s2017_s12 = smul.u32 24, %s349_s21  ;;  %s2377_s21 = sand.u32 1, %s2186_s28  }
  0x22   : > { %s355_s25 = scalar_lea.vmem %s2643_s0, %s2016_s22  ;;  %s2015_s24 = smul.u32 24, %s2377_s21 }
  0x23   : > { %v383_v1 = vld [vmem:[%s355_s25] sm:$0xf]  ;;  %v1886_v2 = vld [vmem:[%s355_s25 + $0x4] sm:$0xf]  ;;  %v1887_v4 = vld [vmem:[%s355_s25 + $0x8] sm:$0xf]  ;;  %s2336_s19 = scalar_lea.vmem %s2632_s7, %s2017_s12  ;;  %s2341_s23 = scalar_lea.vmem %s2633_s8, %s2017_s12 }
  0x24   : > { %1955 = vmatprep.subr.msk.mxu0 %vm395_vm1, %v383_v1  ;;  %1960 = vmatprep.subr.msk.mxu1 %vm395_vm1, %v1886_v2  ;;  %373 = vst.msk [vmem:[%s2336_s19 + $0x10] sm:$0xff] %vm370_vm3, %v2204_v5  ;;  %371 = vst.msk [vmem:[%s2336_s19] sm:$0xff] %vm370_vm3, %v2204_v5  ;;  %s2392_s11 = scalar_lea.vmem [#allocation2], %s2015_s24  ;;  %s333_s25 = scalar_lea.vmem [#allocation4], %s2015_s24 }
  0x25   : > { %1956 = vmatpush3.msk.msra.mxu0 %vm395_vm1, %v383_v1  ;;  %1961 = vmatpush3.msk.msra.mxu1 %vm395_vm1, %v1886_v2  ;;  %372 = vst.msk [vmem:[%s2336_s19 + $0x8] sm:$0xff] %vm370_vm3, %v2204_v5  ;;  %374 = vst.msk [vmem:[%s2341_s23] sm:$0xff] %vm370_vm3, %v2204_v5  ;;  %s1710_s26 = sshll.u32 %s333_s25, 4  ;;  %s1693_s12 = sshll.u32 %s2392_s11, 4  ;;  %s2512_s26 = int_to_ptr.vmem [resolvable:$true] %s1710_s26  ;;  %s2515_s12 = int_to_ptr.vmem [resolvable:$true] %s1693_s12 }
  0x26   : > { %1958 = vmatmul.mubr.msk.f32.vlgmr.msra.gmra.mrb[0].mxu0 %vm388_vm0, %v378_v3  ;;  %1963 = vmatmul.mubr.msk.f32.vlgmr.msra.gmra.mrb[0].mxu1 %vm388_vm0, %v378_v3  ;;  %375 = vst.msk [vmem:[%s2341_s23 + $0x8] sm:$0xff] %vm370_vm3, %v2204_v5  ;;  %376 = vst.msk [vmem:[%s2341_s23 + $0x10] sm:$0xff] %vm370_vm3, %v2204_v5  ;;  %s2634_s24 = smul.u32 384, %s2194_s30  ;;  %s2092_s22 = scalar_lea.vmem %s2515_s12, 384 }
  0x27   : > { %1965 = vmatprep.subr.msk.mxu0 %vm395_vm1, %v1887_v4  ;;  %1967 = vmatprep.mubr.msk.f32.mxu0 %vm388_vm0, %v377_v0  ;;  %p2093_p12 = scmp.ne.s32.totalorder %s2515_s12, %s2092_s22 }
  0x28   : > { %1966 = vmatpush3.msk.msra.mxu0 %vm395_vm1, %v1887_v4  ;;  %1970 = vmatprep.subr.mxu1 %v2204_v5 }
  0x29   : > { %1975 = vmatprep.subr.mxu0 %v2204_v5  ;;  %1972 = vmatprep.mubr.msk.f32.mxu1 %vm2205_vm2, %v2204_v5  ;;  %p2094_p13 = pnand %p2093_p12, %p2295_p4 }
  0x2a   : > { %1968 = vmatmul.mubr.msk.f32.vlgmr.msra.gmra.mrb[2].mxu0 %vm388_vm0, %v378_v3 }
  0x2b   : > { %1977 = vmatprep.mubr.msk.f32.mxu0 %vm2205_vm2, %v2204_v5  ;;  %v1913_v62 = vld [vmem:[%s2336_s19 + $0x10] sm:$0xff]  ;;  %v1541_v63 = vld [vmem:[%s2336_s19] sm:$0xff]  ;;  %p2095_p0 = pneg %p2094_p13 }
  0x2c   : > { %v1910_v4 = vld [vmem:[%s2336_s19 + $0x8] sm:$0xff] }
  0xf9   : > { %v1959_v10 = vpop.f32.mrb[0].mxu0  ;;  %v1964_v11 = vpop.f32.mrb[0].mxu1 }
  0xfa   : > { %v633_v12 = vrot.slane %v1959_v10, %v2364_v8  ;;  %v662_v13 = vmul.f32 %v1959_v10, %v1959_v10  ;;  %v638_v14 = vrot.slane %v1964_v11, %v2364_v8  ;;  %v465_v15 = vpop.f32.mrb[1].mxu0  ;;  %v543_v16 = vpop.f32.mrb[1].mxu1  ;;  %v653_v17 = vrot.slane %v1964_v11, %v2367_v9 }
  0xfb   : > { %v663_v18 = vmul.f32 %v1964_v11, %v1964_v11  ;;  %v648_v19 = vrot.slane %v1959_v10, %v2367_v9  ;;  %v674_v45 = vmul.f32 0.2, %v465_v15  ;;  %v681_v46 = vmul.f32 0.2, %v543_v16 }
  0xfc   : > { %v634_v20 = vsub.f32 %v465_v15, %v633_v12  ;;  %v639_v21 = vsub.f32 %v543_v16, %v638_v14 }
  0xfd   : > { %v664_v22 = vadd.f32 %v663_v18, %v662_v13  ;;  %v1969_v23 = vpop.f32.mrb[2].mxu0 }
  0xfe   : > { %v649_v24 = vmul.f32 %v648_v19, %v634_v20  ;;  %v654_v25 = vmul.f32 %v653_v17, %v639_v21  ;;  %v643_v26 = vrot.slane %v1969_v23, %v2364_v8  ;;  %v621_v27 = vpop.f32.mrb[3].mxu0  ;;  %v665_v28 = vmul.f32 %v1969_v23, %v1969_v23 }
  0xff   : > { %v659_v30 = vrot.slane %v1969_v23, %v2367_v9  ;;  %v687_v47 = vmul.f32 0.2, %v621_v27 }
 0x100   : > { %v655_v29 = vadd.f32 %v654_v25, %v649_v24  ;;  %v644_v31 = vsub.f32 %v621_v27, %v643_v26  ;;  %v666_v32 = vadd.f32 %v665_v28, %v664_v22 }
 0x102   : > { %v660_v33 = vmul.f32 %v659_v30, %v644_v31  ;;  %v667_v34 = vadd.f32 1e-06, %v666_v32 }
 0x104   : > { %v661_v35 = vadd.f32 %v660_v33, %v655_v29  ;;  %v671_v36 = vrot.slane %v667_v34, %v2367_v9 }
 0x106   : > { %2084 = vrcp.f32 %v671_v36  ;;  %vm679_vm5 = vcmp.ge.f32.partialorder %v661_v35, 0.0 }
 0x110   : > { %v2085_v37 = vpop.eup %2084 }
 0x111   : > { %v673_v38 = vmul.f32 %v2085_v37, %v661_v35 }
 0x113   : > { %v688_v39 = vmul.f32 %v673_v38, %v659_v30  ;;  %v675_v40 = vmul.f32 %v673_v38, %v648_v19  ;;  %v682_v41 = vmul.f32 %v673_v38, %v653_v17 }
 0x115   : > { %v689_v42 = vsub.f32 %v621_v27, %v688_v39  ;;  %v676_v43 = vsub.f32 %v465_v15, %v675_v40  ;;  %v683_v44 = vsub.f32 %v543_v16, %v682_v41 }
 0x117   : > { %v690_v48 = vmul.f32 0.8, %v689_v42  ;;  %v677_v49 = vmul.f32 0.8, %v676_v43  ;;  %v684_v50 = vmul.f32 0.8, %v683_v44 }
 0x119   : > { %v691_v51 = vadd.f32 %v690_v48, %v687_v47  ;;  %v678_v52 = vadd.f32 %v677_v49, %v674_v45  ;;  %v685_v53 = vadd.f32 %v684_v50, %v681_v46 }
 0x11b   : > { %v2383_v55 = vsel %vm679_vm5, %v465_v15, %v678_v52  ;;  %v2385_v56 = vsel %vm679_vm5, %v543_v16, %v685_v53  ;;  %v2387_v57 = vsel %vm679_vm5, %v621_v27, %v691_v51 }
 0x11c   : > { %1971 = vmatpush3.msra.mxu1 %v2383_v55  ;;  %1540 = vst.msk [vmem:[%s2392_s11] sm:$0xff] %vm1539_vm4, %v2383_v55  ;;  %1976 = vmatpush3.msra.mxu0 %v2385_v56  ;;  %1909 = vst.msk [vmem:[%s2392_s11 + $0x8] sm:$0xff] %vm1539_vm4, %v2385_v56  ;;  %v1561_v58 = vsel %vm1539_vm4, %v2387_v57, 0.0  ;;  %v1542_v59 = vsel %vm1539_vm4, %v2383_v55, 0.0  ;;  %v1552_v60 = vsel %vm1539_vm4, %v2385_v56, 0.0 }
 0x11d   : > { %1912 = vst.msk [vmem:[%s2392_s11 + $0x10] sm:$0xff] %vm1539_vm4, %v2387_v57  ;;  %1562 = vadd.xlane.f32.xlu1 %v1561_v58  ;;  %1978 = vmatmul.mubr.msk.f32.vlgmr.msra.gmra.mrb[4].mxu0 %vm693_vm6, %v379_v54  ;;  %s2206_s11 = smov [#allocation2]  }
 0x11e   : > { %1543 = vadd.xlane.f32.xlu0 %v1542_v59  ;;  %1973 = vmatmul.mubr.msk.f32.vlgmr.msra.gmra.mrb[2].mxu1 %vm693_vm6, %v379_v54 }
 0x11f   : > { %1980 = vmatprep.subr.mxu1 %v2204_v5  ;;  %1982 = vmatprep.mubr.msk.f32.mxu1 %vm2205_vm2, %v2204_v5 }
 0x120   : > { %1981 = vmatpush3.msra.mxu1 %v2387_v57  ;;  %1987 = vmatprep.mubr.msk.f32.mxu0 %vm693_vm6, %v2420_v61 }
 0x122   : > { %1553 = vadd.xlane.f32.xlu0 %v1552_v60  ;;  %1983 = vmatmul.mubr.msk.f32.vlgmr.msra.gmra.mrb[4].mxu1 %vm693_vm6, %v379_v54 }
 0x123   : > { %1992 = vmatprep.mubr.msk.f32.mxu1 %vm693_vm6, %v2420_v61 }
 0x1aa   : > { %v1563_v0 = vpop.xlane.xlu1 %1562 }
 0x1ab   : > { %v1564_v1 = vadd.f32 %v1913_v62, %v1563_v0  ;;  %v1544_v2 = vpop.xlane.xlu0 %1543 }
 0x1ac   : > { %v1545_v3 = vadd.f32 %v1544_v2, %v1541_v63 }
 0x1ad   : > { %1914 = vst.msk [vmem:[%s2336_s19 + $0x10] sm:$0xff] %vm370_vm3, %v1564_v1 }
 0x1ae   : > { %1547 = vst.msk [vmem:[%s2336_s19] sm:$0xff] %vm370_vm3, %v1545_v3 }
 0x1af   : > { %v1554_v6 = vpop.xlane.xlu0 %1553 }
 0x1b0   : > { %v1555_v10 = vadd.f32 %v1910_v4, %v1554_v6 }
 0x1b2   : > { %1911 = vst.msk [vmem:[%s2336_s19 + $0x8] sm:$0xff] %vm370_vm3, %v1555_v10 }
 0x1b4   : > { %v1647_v11 = vld [vmem:[%s2336_s19 + $0x10] sm:$0xff] }
 0x1b5   : > { %v1650_v12 = vmul.f32 0.0625, %v1647_v11  ;;  %v1645_v13 = vld [vmem:[%s2336_s19] sm:$0xff] }
 0x1b6   : > { %v1648_v14 = vmul.f32 0.0625, %v1645_v13 }
 0x1b7   : > { %1653 = vst.msk [vmem:[%s2336_s19 + $0x10] sm:$0xff] %vm370_vm3, %v1650_v12 }
 0x1b8   : > { %1651 = vst.msk [vmem:[%s2336_s19] sm:$0xff] %vm370_vm3, %v1648_v14 }
 0x1b9   : > { %v1646_v15 = vld [vmem:[%s2336_s19 + $0x8] sm:$0xff] }
 0x1ba   : > { %v1649_v16 = vmul.f32 0.0625, %v1646_v15 }
 0x1bc   : > { %1652 = vst.msk [vmem:[%s2336_s19 + $0x8] sm:$0xff] %vm370_vm3, %v1649_v16  ;;  %s2522_s19 = scalar_lea.hbm %s2630_s5, %s2634_s24 }
 0x1f0   : > { %v833_v17 = vpop.f32.mrb[4].mxu0 }
 0x1f1   : > { %v763_v18 = vpop.f32.mrb[2].mxu1  ;;  %v934_v19 = vmul.f32 %v833_v17, %v833_v17  ;;  %v1979_v20 = vpop.f32.mrb[5].mxu0  ;;  %v912_v21 = vrot.slane %v833_v17, 2  ;;  %v956_v58 = vmul.f32 0.2, %v833_v17  ;;  %v964_v4 = vrot.slane %v833_v17, 7 }
 0x1f2   : > { %v933_v22 = vmul.f32 %v763_v18, %v763_v18  ;;  %v1974_v23 = vpop.f32.mrb[3].mxu1  ;;  %v908_v24 = vrot.slane %v763_v18, 2  ;;  %v941_v54 = vmul.f32 0.2, %v763_v18  ;;  %v950_v3 = vrot.slane %v763_v18, 7 }
 0x1f3   : > { %v914_v25 = vsub.f32 %v833_v17, %v912_v21 }
 0x1f4   : > { %v935_v26 = vadd.f32 %v934_v19, %v933_v22  ;;  %v910_v27 = vsub.f32 %v763_v18, %v908_v24 }
 0x1f5   : > { %v903_v28 = vpop.f32.mrb[4].mxu1  ;;  %v924_v29 = vrot.slane %v914_v25, 7 }
 0x1f6   : > { %v936_v30 = vmul.f32 %v903_v28, %v903_v28  ;;  %v1984_v31 = vpop.f32.mrb[5].mxu1  ;;  %v916_v32 = vrot.slane %v903_v28, 2  ;;  %v920_v33 = vrot.slane %v910_v27, 7  ;;  %v970_v59 = vmul.f32 0.2, %v903_v28 }
 0x1f7   : > { %v926_v34 = vmul.f32 %v924_v29, %v833_v17  ;;  %v978_v11 = vrot.slane %v903_v28, 7 }
 0x1f8   : > { %v937_v35 = vadd.f32 %v936_v30, %v935_v26  ;;  %v918_v36 = vsub.f32 %v903_v28, %v916_v32  ;;  %v922_v37 = vmul.f32 %v920_v33, %v763_v18 }
 0x1fa   : > { %v938_v38 = vadd.f32 1e-06, %v937_v35  ;;  %v927_v39 = vadd.f32 %v926_v34, %v922_v37  ;;  %v929_v40 = vrot.slane %v918_v36, 7 }
 0x1fc   : > { %2086 = vrcp.f32 %v938_v38  ;;  %v931_v41 = vmul.f32 %v929_v40, %v903_v28 }
 0x1fe   : > { %v932_v42 = vadd.f32 %v931_v41, %v927_v39 }
 0x200   : > { %vm949_vm7 = vcmp.ge.f32.partialorder %v932_v42, 0.0 }
 0x206   : > { %v2087_v43 = vpop.eup %2086 }
 0x207   : > { %v940_v44 = vmul.f32 %v2087_v43, %v932_v42 }
 0x209   : > { %v942_v45 = vmul.f32 %v940_v44, %v763_v18  ;;  %v957_v46 = vmul.f32 %v940_v44, %v833_v17  ;;  %v971_v47 = vmul.f32 %v940_v44, %v903_v28 }
 0x20b   : > { %v944_v48 = vrot.slane %v942_v45, 1  ;;  %v959_v49 = vrot.slane %v957_v46, 1  ;;  %v973_v50 = vrot.slane %v971_v47, 1 }
 0x20d   : > { %v946_v51 = vsub.f32 %v763_v18, %v944_v48  ;;  %v961_v52 = vsub.f32 %v833_v17, %v959_v49  ;;  %v975_v53 = vsub.f32 %v903_v28, %v973_v50  ;;  %v381_v17 = vld [vmem:[%s2645_s3 + $0x8] sm:$0x1] }
 0x20f   : > { %v947_v60 = vmul.f32 0.8, %v946_v51  ;;  %v962_v62 = vmul.f32 0.8, %v961_v52  ;;  %v976_v63 = vmul.f32 0.8, %v975_v53 }
 0x211   : > { %v948_v0 = vadd.f32 %v947_v60, %v941_v54  ;;  %v963_v1 = vadd.f32 %v962_v62, %v956_v58  ;;  %v977_v2 = vadd.f32 %v976_v63, %v970_v59  ;;  %v382_v60 = vld [vmem:[%s2646_s4] sm:$0xf] }
 0x213   : > { %v953_v6 = vrot.slane %v948_v0, 7  ;;  %v967_v10 = vrot.slane %v963_v1, 7  ;;  %v981_v12 = vrot.slane %v977_v2, 7  ;;  %v1493_v1 = vsub.s32 3, %v2361_v7 }
 0x215   : > { %v955_v13 = vsel %vm949_vm7, %v950_v3, %v953_v6  ;;  %v969_v14 = vsel %vm949_vm7, %v964_v4, %v967_v10  ;;  %v983_v15 = vsel %vm949_vm7, %v978_v11, %v981_v12 }
 0x216   : > { %v987_v16 = vrot.slane %v955_v13, %v2364_v8  ;;  %v992_v19 = vrot.slane %v969_v14, %v2364_v8  ;;  %v997_v20 = vrot.slane %v983_v15, %v2364_v8 }
 0x218   : > { %v988_v21 = vsub.f32 %v2383_v55, %v987_v16  ;;  %v993_v22 = vsub.f32 %v2385_v56, %v992_v19  ;;  %v998_v18 = vsub.f32 %v2387_v57, %v997_v20 }
 0x21a   : > { %1985 = vmatprep.subr.mxu0 %v988_v21  ;;  %1990 = vmatprep.subr.mxu1 %v993_v22 }
 0x21b   : > { %1986 = vmatpush3.msra.mxu0 %v988_v21  ;;  %1991 = vmatpush3.msra.mxu1 %v993_v22 }
 0x21c   : > { %1988 = vmatmul.mubr.msk.f32.vlgmr.msra.gmra.mrb[6].mxu0 %vm693_vm6, %v381_v17  ;;  %1993 = vmatmul.mubr.msk.f32.vlgmr.msra.gmra.mrb[6].mxu1 %vm693_vm6, %v381_v17 }
 0x21d   : > { %1995 = vmatprep.subr.mxu0 %v998_v18  ;;  %1997 = vmatprep.mubr.msk.f32.mxu0 %vm693_vm6, %v2420_v61 }
 0x21e   : > { %1996 = vmatpush3.msra.mxu0 %v998_v18  ;;  %2000 = vmatprep.subr.mxu1 %v2204_v5 }
 0x21f   : > { %2005 = vmatprep.subr.mxu0 %v2204_v5  ;;  %2002 = vmatprep.mubr.msk.f32.mxu1 %vm2205_vm2, %v2204_v5 }
 0x220   : > { %1998 = vmatmul.mubr.msk.f32.vlgmr.msra.gmra.mrb[8].mxu0 %vm693_vm6, %v381_v17 }
 0x221   : > { %2007 = vmatprep.mubr.msk.f32.mxu0 %vm2205_vm2, %v2204_v5 }
 0x2ef   : > { %v1989_v55 = vpop.f32.mrb[6].mxu0  ;;  %v1994_v56 = vpop.f32.mrb[6].mxu1 }
 0x2f0   : > { %v1233_v57 = vrot.slane %v1989_v55, %v2367_v9  ;;  %v1247_v23 = vmul.f32 %v1989_v55, %v1989_v55  ;;  %v1238_v61 = vrot.slane %v1994_v56, %v2367_v9  ;;  %v1248_v24 = vmul.f32 %v1994_v56, %v1994_v56  ;;  %v1071_v25 = vpop.f32.mrb[7].mxu0  ;;  %v1146_v26 = vpop.f32.mrb[7].mxu1 }
 0x2f1   : > { %v1259_v48 = vmul.f32 0.2, %v1071_v25  ;;  %v1266_v49 = vmul.f32 0.2, %v1146_v26 }
 0x2f2   : > { %v1249_v27 = vadd.f32 %v1248_v24, %v1247_v23  ;;  %v1234_v28 = vmul.f32 %v1233_v57, %v1071_v25  ;;  %v1239_v29 = vmul.f32 %v1238_v61, %v1146_v26 }
 0x2f3   : > { %v1999_v30 = vpop.f32.mrb[8].mxu0 }
 0x2f4   : > { %v1240_v31 = vadd.f32 %v1239_v29, %v1234_v28  ;;  %v1244_v32 = vrot.slane %v1999_v30, %v2367_v9  ;;  %v1250_v33 = vmul.f32 %v1999_v30, %v1999_v30  ;;  %v1221_v34 = vpop.f32.mrb[9].mxu0 }
 0x2f5   : > { %v1272_v50 = vmul.f32 0.2, %v1221_v34 }
 0x2f6   : > { %v1251_v35 = vadd.f32 %v1250_v33, %v1249_v27  ;;  %v1245_v36 = vmul.f32 %v1244_v32, %v1221_v34 }
 0x2f8   : > { %v1252_v37 = vadd.f32 1e-06, %v1251_v35  ;;  %v1246_v38 = vadd.f32 %v1245_v36, %v1240_v31 }
 0x2fa   : > { %v1256_v39 = vrot.slane %v1252_v37, %v2367_v9  ;;  %vm1264_vm8 = vcmp.ge.f32.partialorder %v1246_v38, 0.0 }
 0x2fc   : > { %2088 = vrcp.f32 %v1256_v39  ;;  %v1618_v39 = vsub.s32 2, %v2361_v7 }
 0x306   : > { %v2089_v40 = vpop.eup %2088 }
 0x307   : > { %v1258_v41 = vmul.f32 %v2089_v40, %v1246_v38 }
 0x309   : > { %v1273_v42 = vmul.f32 %v1258_v41, %v1244_v32  ;;  %v1260_v43 = vmul.f32 %v1258_v41, %v1233_v57  ;;  %v1267_v44 = vmul.f32 %v1258_v41, %v1238_v61 }
 0x30b   : > { %v1274_v45 = vsub.f32 %v1221_v34, %v1273_v42  ;;  %v1261_v46 = vsub.f32 %v1071_v25, %v1260_v43  ;;  %v1268_v47 = vsub.f32 %v1146_v26, %v1267_v44 }
 0x30d   : > { %v1275_v51 = vmul.f32 0.8, %v1274_v45  ;;  %v1262_v52 = vmul.f32 0.8, %v1261_v46  ;;  %v1269_v53 = vmul.f32 0.8, %v1268_v47 }
 0x30f   : > { %v1276_v54 = vadd.f32 %v1275_v51, %v1272_v50  ;;  %v1263_v58 = vadd.f32 %v1262_v52, %v1259_v48  ;;  %v1270_v59 = vadd.f32 %v1269_v53, %v1266_v49 }
 0x311   : > { %v2471_v62 = vsel %vm1264_vm8, %v1071_v25, %v1263_v58  ;;  %v2473_v63 = vsel %vm1264_vm8, %v1146_v26, %v1270_v59  ;;  %v2475_v0 = vsel %vm1264_vm8, %v1221_v34, %v1276_v54 }
 0x312   : > { %2001 = vmatpush3.msra.mxu1 %v2471_v62  ;;  %2006 = vmatpush3.msra.mxu0 %v2473_v63 }
 0x313   : > { %2003 = vmatmul.mubr.msk.f32.vlgmr.msra.gmra.mrb[8].mxu1 %vm693_vm6, %v382_v60  ;;  %2010 = vmatprep.subr.mxu1 %v2204_v5 }
 0x314   : > { %2008 = vmatmul.mubr.msk.f32.vlgmr.msra.gmra.mrb[10].mxu0 %vm693_vm6, %v382_v60  ;;  %2011 = vmatpush3.msra.mxu1 %v2475_v0 }
 0x315   : > { %2012 = vmatprep.mubr.msk.f32.mxu1 %vm2205_vm2, %v2204_v5 }
 0x317   : > { %2013 = vmatmul.mubr.msk.f32.vlgmr.msra.gmra.mrb[10].mxu1 %vm693_vm6, %v382_v60 }
 0x3e6   : > { %v1347_v2 = vpop.f32.mrb[8].mxu1 }
 0x3e7   : > { %v1494_v3 = vrot.slane %v1347_v2, %v1493_v1  ;;  %v1508_v4 = vmul.f32 %v1347_v2, %v1347_v2  ;;  %v1417_v6 = vpop.f32.mrb[10].mxu0  ;;  %v2004_v10 = vpop.f32.mrb[9].mxu1  ;;  %v1520_v30 = vmul.f32 0.2, %v1347_v2 }
 0x3e8   : > { %v1499_v11 = vrot.slane %v1417_v6, %v1493_v1  ;;  %v1509_v12 = vmul.f32 %v1417_v6, %v1417_v6  ;;  %v2009_v13 = vpop.f32.mrb[11].mxu0  ;;  %v1527_v31 = vmul.f32 0.2, %v1417_v6 }
 0x3e9   : > { %v1495_v14 = vmul.f32 %v1494_v3, %v1347_v2 }
 0x3ea   : > { %v1500_v15 = vmul.f32 %v1499_v11, %v1417_v6  ;;  %v1510_v16 = vadd.f32 %v1509_v12, %v1508_v4  ;;  %v1487_v19 = vpop.f32.mrb[10].mxu1 }
 0x3eb   : > { %v1505_v20 = vrot.slane %v1487_v19, %v1493_v1  ;;  %v1511_v21 = vmul.f32 %v1487_v19, %v1487_v19  ;;  %v2014_v22 = vpop.f32.mrb[11].mxu1  ;;  %v1533_v32 = vmul.f32 0.2, %v1487_v19 }
 0x3ec   : > { %v1501_v5 = vadd.f32 %v1500_v15, %v1495_v14 }
 0x3ed   : > { %v1506_v17 = vmul.f32 %v1505_v20, %v1487_v19  ;;  %v1512_v18 = vadd.f32 %v1511_v21, %v1510_v16 }
 0x3ef   : > { %v1507_v55 = vadd.f32 %v1506_v17, %v1501_v5  ;;  %v1513_v56 = vadd.f32 1e-06, %v1512_v18 }
 0x3f1   : > { %v1517_v57 = vrot.slane %v1513_v56, %v1493_v1  ;;  %vm1525_vm9 = vcmp.ge.f32.partialorder %v1507_v55, 0.0 }
 0x3f3   : > { %2090 = vrcp.f32 %v1517_v57 }
 0x3fd   : > { %v2091_v23 = vpop.eup %2090 }
 0x3fe   : > { %v1519_v61 = vmul.f32 %v2091_v23, %v1507_v55 }
 0x400   : > { %v1534_v24 = vmul.f32 %v1519_v61, %v1505_v20  ;;  %v1521_v25 = vmul.f32 %v1519_v61, %v1494_v3  ;;  %v1528_v26 = vmul.f32 %v1519_v61, %v1499_v11 }
 0x402   : > { %v1535_v27 = vsub.f32 %v1487_v19, %v1534_v24  ;;  %v1522_v28 = vsub.f32 %v1347_v2, %v1521_v25  ;;  %v1529_v29 = vsub.f32 %v1417_v6, %v1528_v26 }
 0x404   : > { %v1536_v33 = vmul.f32 0.8, %v1535_v27  ;;  %v1523_v34 = vmul.f32 0.8, %v1522_v28  ;;  %v1530_v35 = vmul.f32 0.8, %v1529_v29 }
 0x406   : > { %v1524_v36 = vadd.f32 %v1523_v34, %v1520_v30  ;;  %v1531_v37 = vadd.f32 %v1530_v35, %v1527_v31  ;;  %v1537_v38 = vadd.f32 %v1536_v33, %v1533_v32 }
 0x408   : > { %v1526_v40 = vsel %vm1525_vm9, %v1347_v2, %v1524_v36  ;;  %v1532_v41 = vsel %vm1525_vm9, %v1417_v6, %v1531_v37  ;;  %v1538_v42 = vsel %vm1525_vm9, %v1487_v19, %v1537_v38 }
 0x409   : > { %v1593_v43 = vrot.slane %v1526_v40, %v2364_v8  ;;  %v1598_v44 = vrot.slane %v1532_v41, %v2364_v8  ;;  %v1604_v45 = vrot.slane %v1538_v42, %v2364_v8  ;;  %v1569_v46 = vrot.slane %v1526_v40, %v2367_v9 }
 0x40a   : > { %v1574_v47 = vrot.slane %v1532_v41, %v2367_v9  ;;  %v1580_v48 = vrot.slane %v1538_v42, %v2367_v9  ;;  %v1619_v49 = vrot.slane %v1526_v40, %v1618_v39  ;;  %v1624_v50 = vrot.slane %v1532_v41, %v1618_v39 }
 0x40b   : > { %v1594_v7 = vmul.f32 %v1593_v43, %v2471_v62  ;;  %v1599_v51 = vmul.f32 %v1598_v44, %v2473_v63  ;;  %v1570_v52 = vmul.f32 %v1569_v46, %v2471_v62  ;;  %v1605_v59 = vmul.f32 %v1604_v45, %v2475_v0 }
 0x40c   : > { %v1575_v53 = vmul.f32 %v1574_v47, %v2473_v63  ;;  %v1620_v54 = vmul.f32 %v1619_v49, %v2471_v62  ;;  %v1625_v8 = vmul.f32 %v1624_v50, %v2473_v63  ;;  %v1630_v60 = vrot.slane %v1538_v42, %v1618_v39 }
 0x40d   : > { %v1600_v58 = vadd.f32 %v1599_v51, %v1594_v7  ;;  %v1581_v1 = vmul.f32 %v1580_v48, %v2475_v0 }
 0x40e   : > { %v1576_v9 = vadd.f32 %v1575_v53, %v1570_v52  ;;  %v1626_v2 = vadd.f32 %v1625_v8, %v1620_v54  ;;  %v1631_v4 = vmul.f32 %v1630_v60, %v2475_v0 }
 0x40f   : > { %v1606_v3 = vadd.f32 %v1605_v59, %v1600_v58 }
 0x410   : > { %v1582_v6 = vadd.f32 %v1581_v1, %v1576_v9  ;;  %v1632_v62 = vadd.f32 %v1631_v4, %v1626_v2 }
 0x411   : > { %v1611_v10 = vsel %vm1539_vm4, %v1606_v3, 0.0  ;;  %1915 = vst.msk [vmem:[%s333_s25 + $0x8] sm:$0xff] %vm1539_vm4, %v1606_v3 }
 0x412   : > { %1612 = vadd.xlane.f32.xlu0 %v1611_v10  ;;  %v1585_v63 = vsel %vm1539_vm4, %v1582_v6, 0.0  ;;  %1583 = vst.msk [vmem:[%s333_s25] sm:$0xff] %vm1539_vm4, %v1582_v6  ;;  %1918 = vst.msk [vmem:[%s333_s25 + $0x10] sm:$0xff] %vm1539_vm4, %v1632_v62  ;;  %v1637_v0 = vsel %vm1539_vm4, %v1632_v62, 0.0  ;;  %s2096_s25 = sshll.u32 %s2206_s11, 4  ;;  %s2097_s25 = int_to_ptr.vmem [resolvable:$false] %s2096_s25 }
 0x413   : > { %1586 = vadd.xlane.f32.xlu1 %v1585_v63  ;;  %s2098_s0 = scalar_lea.vmem %s2097_s25, 768  ;;  %p2099_p1 = scmp.lt.s32.totalorder %s2515_s12, %s2097_s25 }
 0x414   : > { %p2100_p2 = scmp.lt.s32.totalorder %s2098_s0, %s2092_s22 }
 0x416   : > { %p2101_p3 = por %p2100_p2, %p2099_p1 }
 0x417   : > { %1638 = vadd.xlane.f32.xlu1 %v1637_v0 }
 0x418   : > { %p2102_p5 = pnand %p2101_p3, %p2095_p0 }
 0x41a   : > { %2105 = shalt.err (!%p2102_p5)
}
 0x41b   : > { %s2106_s14 = scalar_lea.hbm %s2522_s19, 384  ;;  %s2110_s11 = scalar_lea.hbm %s2630_s5, 768 }
 0x41c   : > { %p2107_p6 = scmp.ne.s32.totalorder %s2522_s19, %s2106_s14  ;;  %p2111_p10 = scmp.lt.u32.totalorder %s2522_s19, %s2630_s5 }
 0x41d   : > { %p2112_p11 = scmp.lt.u32.totalorder %s2110_s11, %s2106_s14  ;;  %p2114_p13 = scmp.lt.u32.totalorder %s2106_s14, %s2522_s19 }
 0x41e   : > { %p2108_p7 = pnand %p2107_p6, %p2295_p4 }
 0x41f   : > { %p2113_p12 = por %p2112_p11, %p2111_p10 }
 0x420   : > { %p2109_p9 = pneg %p2108_p7 }
 0x421   : > { %p2115_p0 = por %p2114_p13, %p2113_p12 }
 0x423   : > { %p2116_p1 = pnand %p2115_p0, %p2109_p9 }
 0x425   : > { %2119 = shalt.err (!%p2116_p1)
}
 0x426   : > { %s2207_s0 = smov 128   ;;  %s2208_s24 = smov 8  }
 0x427   : > { %s2647_s20 = scalar_lea.sflag [#allocation3], %s2377_s21  ;;  %s2648_s22 = smul.u32 384, %s2194_s30 }
 0x428   : > { %2020 = dma.vmem_to_hbm [thread:$0]  (%p2295_p4), %s2515_s12, 384, %s2522_s19, %s2647_s20, %s2207_s0, %s2207_s0, %s2208_s24  }
 0x429   : > { %s2556_s11 = scalar_lea.hbm %s2631_s6, %s2648_s22  ;;  %s1669_s25 = scalar_lea.sflag [#allocation5], %s2377_s21 }
 0x42a   : > { %s2120_s1 = scalar_lea.vmem %s2512_s26, 384  ;;  %s2209_s2 = smov [#allocation4]  }
 0x42b   : > { %p2121_p2 = scmp.ne.s32.totalorder %s2512_s26, %s2120_s1  ;;  %s2124_s3 = sshll.u32 %s2209_s2, 4  ;;  %s2125_s3 = int_to_ptr.vmem [resolvable:$false] %s2124_s3 }
 0x42c   : > { %s2126_s4 = scalar_lea.vmem %s2125_s3, 768  ;;  %p2127_p6 = scmp.lt.s32.totalorder %s2512_s26, %s2125_s3 }
 0x42d   : > { %p2122_p3 = pnand %p2121_p2, %p2295_p4  ;;  %p2128_p7 = scmp.lt.s32.totalorder %s2126_s4, %s2120_s1 }
 0x42f   : > { %p2123_p5 = pneg %p2122_p3  ;;  %p2129_p9 = por %p2128_p7, %p2127_p6 }
 0x431   : > { %p2130_p10 = pnand %p2129_p9, %p2123_p5 }
 0x433   : > { %2133 = shalt.err (!%p2130_p10)
}
 0x434   : > { %s2134_s30 = scalar_lea.hbm %s2556_s11, 384  ;;  %s2138_s2 = scalar_lea.hbm %s2631_s6, 768 }
 0x435   : > { %p2135_p11 = scmp.ne.s32.totalorder %s2556_s11, %s2134_s30  ;;  %p2139_p0 = scmp.lt.u32.totalorder %s2556_s11, %s2631_s6 }
 0x436   : > { %p2140_p1 = scmp.lt.u32.totalorder %s2138_s2, %s2134_s30  ;;  %p2142_p3 = scmp.lt.u32.totalorder %s2134_s30, %s2556_s11 }
 0x437   : > { %p2136_p12 = pnand %p2135_p11, %p2295_p4 }
 0x438   : > { %p2141_p2 = por %p2140_p1, %p2139_p0 }
 0x439   : > { %p2137_p13 = pneg %p2136_p12 }
 0x43a   : > { %p2143_p5 = por %p2142_p3, %p2141_p2 }
 0x43c   : > { %p2144_p6 = pnand %p2143_p5, %p2137_p13 }
 0x43e   : > { %2147 = shalt.err (!%p2144_p6)
}
 0x43f   : > { %2021 = dma.vmem_to_hbm [thread:$0]  (%p2295_p4), %s2512_s26, 384, %s2556_s11, %s1669_s25, %s2207_s0, %s2207_s0, %s2208_s24  }
 0x440   : > { %v1916_v11 = vld [vmem:[%s2341_s23 + $0x8] sm:$0xff]  ;;  %v1584_v12 = vld [vmem:[%s2341_s23] sm:$0xff]  ;;  %v1919_v19 = vld [vmem:[%s2341_s23 + $0x10] sm:$0xff] }
 0x49f   : > { %v1613_v13 = vpop.xlane.xlu0 %1612 }
 0x4a0   : > { %v1614_v14 = vadd.f32 %v1916_v11, %v1613_v13  ;;  %v1587_v15 = vpop.xlane.xlu1 %1586 }
 0x4a1   : > { %v1588_v16 = vadd.f32 %v1587_v15, %v1584_v12 }
 0x4a2   : > { %1917 = vst.msk [vmem:[%s2341_s23 + $0x8] sm:$0xff] %vm370_vm3, %v1614_v14 }
 0x4a3   : > { %1589 = vst.msk [vmem:[%s2341_s23] sm:$0xff] %vm370_vm3, %v1588_v16 }
 0x4a4   : > { %v1639_v20 = vpop.xlane.xlu1 %1638 }
 0x4a5   : > { %v1640_v21 = vadd.f32 %v1919_v19, %v1639_v20 }
 0x4a7   : > { %1920 = vst.msk [vmem:[%s2341_s23 + $0x10] sm:$0xff] %vm370_vm3, %v1640_v21 }
 0x4a9   : > { %v1655_v22 = vld [vmem:[%s2341_s23 + $0x8] sm:$0xff] }
 0x4aa   : > { %v1658_v5 = vmul.f32 0.0625, %v1655_v22  ;;  %v1654_v17 = vld [vmem:[%s2341_s23] sm:$0xff] }
 0x4ab   : > { %v1657_v18 = vmul.f32 0.0625, %v1654_v17 }
 0x4ac   : > { %1661 = vst.msk [vmem:[%s2341_s23 + $0x8] sm:$0xff] %vm370_vm3, %v1658_v5 }
 0x4ad   : > { %1660 = vst.msk [vmem:[%s2341_s23] sm:$0xff] %vm370_vm3, %v1657_v18 }
 0x4ae   : > { %v1656_v55 = vld [vmem:[%s2341_s23 + $0x10] sm:$0xff] }
 0x4af   : > { %v1659_v56 = vmul.f32 0.0625, %v1656_v55 }
 0x4b1   : > { %1662 = vst.msk [vmem:[%s2341_s23 + $0x10] sm:$0xff] %vm370_vm3, %v1659_v56 }
 0x4b2 PF: > { %p2031_p4 = scmp.ge.s32.totalorder %s2202_s10, 2  ;;  %s1731_s1 = sand.u32 1, %s2182_s27  }
 0x4b3   : > { %s1732_s4 = scalar_lea.sflag [#allocation3], %s1731_s1 }
 0x4b4   : > { %p2025_p7 = pnand %p2031_p4, %p2302_p8 }
 0x4b6   : > { %2173 = dma.done.wait (!%p2025_p7), %s1732_s4, 384  }
 0x4b7   : > { %2175 = vsyncadd (!%p2025_p7), %s1732_s4, 4294966912  ;;  %s1741_s15 = scalar_lea.sflag [#allocation5], %s1731_s1 }
 0x4b8   : > { %2177 = dma.done.wait (!%p2025_p7), %s1741_s15, 384  }
 0x4b9   : > { %2179 = vsyncadd (!%p2025_p7), %s1741_s15, 4294966912  ;;  %s25_s10 = sadd.s32 1, %s2202_s10   ;;  %s2649_s27 = smov %s2186_s28 }
 0x4ba   : > { %p22_p9 = scmp.ge.s32.totalorder %s25_s10, 4   ;;  %s2650_s28 = smov %s2190_s29 }
 0x4bb   : > { %s2651_s29 = smov %s2308_s18  ;;  %s2652_s30 = smov %s2198_s9 }
 0x4bc   : > { %s2653_s9 = smov %s2655_s13  ;;  %24 = sbr.rel (!%p22_p9) target bundleno = 12 (0xc), region = 134 }
 0x4c3   :  { %1762 = vsyncpa [#allocation3], 1 }
 0x4c4   :  { %1764 = vsyncpa [#allocation3 + $0x1], 1 }
 0x4c5   :  { %1765 = vsyncpa [#allocation5], 1 }
 0x4c6   :  { %1767 = vsyncpa [#allocation5 + $0x1], 1 }

</bundles_post_ra>
